<compile_context>
chip_gen: v7x
topology: tpu7x:2x2x1
jax: 0.10.0
libtpu: 0.0.40
codegen_flags: <defaults>
</compile_context>

<pallas_src>
import jax
import jax.numpy as jnp
from jax.experimental import pallas as pl
from jax.experimental.pallas import tpu as pltpu

PAD_IDX = 1
SOS_IDX = 2
EOS_IDX = 3

_VMEM_LIMIT = None


def _round_up(x, m):
    return ((x + m - 1) // m) * m


def _vmem_limit_bytes():
    """3/4 of physical VMEM per generation; conservative fallback if unknown."""
    global _VMEM_LIMIT
    if _VMEM_LIMIT is None:
        try:
            cap = int(pltpu.get_tpu_info().vmem_capacity_bytes)
        except Exception:
            cap = 64 * 1024 * 1024
        _VMEM_LIMIT = cap * 3 // 4
    return _VMEM_LIMIT


# --------------------------------------------------------------------------
# Kernel 1: one bidirectional GRU layer, both directions in one call.
# grid = (2, T): direction axis "parallel", time axis "arbitrary".
# Input-to-hidden gates (gx) are precomputed outside; only h @ whh stays in
# the serial recurrence.  Hidden state lives in VMEM scratch.
# --------------------------------------------------------------------------
def _make_bigru_kernel(H, fused, w_dtype):
    def kernel(gx_ref, whh_ref, bhh_ref, out_ref, hT_ref, h_scr):
        t = pl.program_id(1)

        @pl.when(t == 0)
        def _():
            h_scr[...] = jnp.zeros_like(h_scr)

        h = h_scr[...]                                   # (B, H) f32
        hm = h.astype(w_dtype)
        if fused:
            gh = (jnp.dot(hm, whh_ref[0], preferred_element_type=jnp.float32)
                  + bhh_ref[0])                          # (B, 3H)
            gh_r, gh_z, gh_n = gh[:, :H], gh[:, H:2 * H], gh[:, 2 * H:]
        else:
            gh_r = jnp.dot(hm, whh_ref[0, 0], preferred_element_type=jnp.float32) + bhh_ref[0, 0]
            gh_z = jnp.dot(hm, whh_ref[0, 1], preferred_element_type=jnp.float32) + bhh_ref[0, 1]
            gh_n = jnp.dot(hm, whh_ref[0, 2], preferred_element_type=jnp.float32) + bhh_ref[0, 2]
        r = jax.nn.sigmoid(gx_ref[0, 0, 0] + gh_r)
        z = jax.nn.sigmoid(gx_ref[0, 0, 1] + gh_z)
        n = jnp.tanh(gx_ref[0, 0, 2] + r * gh_n)
        h_new = (1.0 - z) * n + z * h

        h_scr[...] = h_new
        out_ref[0, 0] = h_new

        @pl.when(t == pl.num_programs(1) - 1)
        def _():
            hT_ref[0] = h_new                            # final hidden, last step only

    return kernel


def bigru_layer(gx, whh_g, bhh_g, *, fused, w_dtype):
    """gx: (2, T, 3, B, H) precomputed input gates (dir, time, gate, B, H)."""
    _, T, _, B, H = gx.shape
    kernel = _make_bigru_kernel(H, fused, w_dtype)

    def time_idx(d, t):                                  # fwd reads t, bwd reads T-1-t
        return t * (1 - 2 * d) + d * (T - 1)

    def build(single_buffer):
        def resident(arr):                               # weights: fetched once per dir
            nd = arr.ndim
            imap = lambda d, t, _nd=nd: (d,) + (0,) * (_nd - 1)
            shape = (1,) + arr.shape[1:]
            if single_buffer:
                return pl.BlockSpec(shape, imap, pipeline_mode=pl.Buffered(1))
            return pl.BlockSpec(shape, imap)

        return pl.pallas_call(
            kernel,
            out_shape=(jax.ShapeDtypeStruct((2, T, B, H), jnp.float32),
                       jax.ShapeDtypeStruct((2, B, H), jnp.float32)),
            grid=(2, T),
            in_specs=[
                pl.BlockSpec((1, 1, 3, B, H),
                             lambda d, t: (d, time_idx(d, t), 0, 0, 0)),
                resident(whh_g),
                resident(bhh_g),
            ],
            out_specs=(
                pl.BlockSpec((1, 1, B, H), lambda d, t: (d, time_idx(d, t), 0, 0)),
                pl.BlockSpec((1, B, H), lambda d, t: (d, 0, 0)),
            ),
            scratch_shapes=[pltpu.VMEM((B, H), jnp.float32)],
            compiler_params=pltpu.CompilerParams(
                # TODO(synk): use pltpu.CORE_PARALLEL on v7x so fwd/bwd land on
                # the two TensorCores; plain "parallel" is neutral on v5e/v6e.
                dimension_semantics=("parallel", "arbitrary"),
                vmem_limit_bytes=_vmem_limit_bytes()),
        )(gx, whh_g, bhh_g)

    try:
        return build(True)
    except Exception:   # pipeline_mode=pl.Buffered unsupported -> double-buffer
        return build(False)


# --------------------------------------------------------------------------
# Kernel 2: fused teacher-forced decoder loop.
# grid = (T_dec,) "arbitrary".  All weights / enc / mask resident (constant
# index maps, single-buffered); h0/h1 carried in VMEM scratch; emits the
# per-step concat output (vocab projection hoisted out of the loop).
# --------------------------------------------------------------------------
def _make_decoder_kernel(H, fused, w_dtype, mxu_attention):
    def rec_gates(h, w_ref, b_ref):
        hm = h.astype(w_dtype)
        if fused:
            g = jnp.dot(hm, w_ref[...], preferred_element_type=jnp.float32) + b_ref[...]
            return g[:, :H], g[:, H:2 * H], g[:, 2 * H:]
        return (jnp.dot(hm, w_ref[0], preferred_element_type=jnp.float32) + b_ref[0],
                jnp.dot(hm, w_ref[1], preferred_element_type=jnp.float32) + b_ref[1],
                jnp.dot(hm, w_ref[2], preferred_element_type=jnp.float32) + b_ref[2])

    def kernel(gx0_ref, enc_ref, mbias_ref, h0i_ref, h1i_ref,
               whh0_ref, bhh0_ref,
               wih1_ref, bih1_ref, whh1_ref, bhh1_ref,
               wct_ref, wcb_ref, bc_ref,
               cat_ref, h0_scr, h1_scr):
        t = pl.program_id(0)

        @pl.when(t == 0)
        def _():
            h0_scr[...] = h0i_ref[...]
            h1_scr[...] = h1i_ref[...]

        h0 = h0_scr[...]
        h1 = h1_scr[...]

        # ---- GRU layer 0 (input gates hoisted out of the loop) ----
        gh_r, gh_z, gh_n = rec_gates(h0, whh0_ref, bhh0_ref)
        r = jax.nn.sigmoid(gx0_ref[0, 0] + gh_r)
        z = jax.nn.sigmoid(gx0_ref[0, 1] + gh_z)
        n = jnp.tanh(gx0_ref[0, 2] + r * gh_n)
        h0_new = (1.0 - z) * n + z * h0

        # ---- GRU layer 1 (input = h0_new) ----
        gx_r, gx_z, gx_n = rec_gates(h0_new, wih1_ref, bih1_ref)
        gh_r, gh_z, gh_n = rec_gates(h1, whh1_ref, bhh1_ref)
        r = jax.nn.sigmoid(gx_r + gh_r)
        z = jax.nn.sigmoid(gx_z + gh_z)
        n = jnp.tanh(gx_n + r * gh_n)
        h1_new = (1.0 - z) * n + z * h1

        h0_scr[...] = h0_new
        h1_scr[...] = h1_new

        # ---- dot attention over L (pad positions carry an additive bias) ----
        enc = enc_ref[...]                                   # (B, L, H) w_dtype
        if mxu_attention:
            h1q = h1_new.astype(w_dtype)[:, None, :]         # (B, 1, H)
            scores = jnp.einsum('bqh,blh->bql', h1q, enc,
                                preferred_element_type=jnp.float32)
            scores = scores + mbias_ref[...][:, None, :]     # (B, 1, L)
            s_max = jnp.max(scores, axis=-1, keepdims=True)
            e = jnp.exp(scores - s_max)
            attn = e * pl.reciprocal(jnp.sum(e, axis=-1, keepdims=True), approx=True)
            context = jnp.sum(
                jnp.einsum('bql,blh->bqh', attn.astype(w_dtype), enc,
                           preferred_element_type=jnp.float32), axis=1)   # (B, H)
        else:
            # VPU fallback (kept only in case batched dot_general fails to lower)
            encf = enc.astype(jnp.float32)
            scores = jnp.sum(h1_new[:, None, :] * encf, axis=-1) + mbias_ref[...]
            s_max = jnp.max(scores, axis=-1, keepdims=True)
            e = jnp.exp(scores - s_max)
            attn = e * pl.reciprocal(jnp.sum(e, axis=-1, keepdims=True), approx=True)
            context = jnp.sum(attn[:, :, None] * encf, axis=1)

        # concat([rnn_out, ctx]) @ Wc == rnn_out @ Wc_top + ctx @ Wc_bot
        cat_ref[0] = jnp.tanh(
            jnp.dot(h1_new.astype(w_dtype), wct_ref[...],
                    preferred_element_type=jnp.float32)
            + jnp.dot(context.astype(w_dtype), wcb_ref[...],
                      preferred_element_type=jnp.float32)
            + bc_ref[...])

    return kernel


def decoder_loop(gx0, enc_blh, mask_bias, h0, h1, dp, *, fused, w_dtype):
    Tdec, _, B, H = gx0.shape
    invariants = (enc_blh, mask_bias, h0, h1,
                  dp['whh0'], dp['bhh0'],
                  dp['wih1'], dp['bih1'], dp['whh1'], dp['bhh1'],
                  dp['wct'], dp['wcb'], dp['bc'])

    def build(single_buffer, mxu_attention):
        kernel = _make_decoder_kernel(H, fused, w_dtype, mxu_attention)

        def resident(arr):
            imap = lambda t, _nd=arr.ndim: (0,) * _nd
            if single_buffer:
                return pl.BlockSpec(arr.shape, imap, pipeline_mode=pl.Buffered(1))
            return pl.BlockSpec(arr.shape, imap)

        return pl.pallas_call(
            kernel,
            out_shape=jax.ShapeDtypeStruct((Tdec, B, H), jnp.float32),
            grid=(Tdec,),
            in_specs=[pl.BlockSpec((1, 3, B, H), lambda t: (t, 0, 0, 0))]   # per step
                     + [resident(a) for a in invariants],
            out_specs=pl.BlockSpec((1, B, H), lambda t: (t, 0, 0)),
            scratch_shapes=[pltpu.VMEM((B, H), jnp.float32),
                            pltpu.VMEM((B, H), jnp.float32)],
            compiler_params=pltpu.CompilerParams(
                dimension_semantics=("arbitrary",),
                vmem_limit_bytes=_vmem_limit_bytes()),
        )(gx0, *invariants)

    # Prefer single-buffered invariants + MXU attention; degrade gracefully if
    # this jax/Mosaic build rejects either feature (fallback never reorders math).
    last_err = None
    for sb, mxu in ((True, True), (True, False), (False, True), (False, False)):
        try:
            return build(sb, mxu)
        except Exception as e:      # lowering-support probe, not error hiding
            last_err = e
    raise last_err


# --------------------------------------------------------------------------
# Kernel 3: batched vocab projection, tiled over (rows, vocab) on a 2-D
# "parallel" grid so wo / logits never have to be fully VMEM-resident.
# --------------------------------------------------------------------------
def _out_proj_kernel(x_ref, wo_ref, bo_ref, o_ref):
    x = x_ref[...].astype(wo_ref.dtype)
    o_ref[...] = (jnp.dot(x, wo_ref[...], preferred_element_type=jnp.float32)
                  + bo_ref[...])


def out_projection(x2d, wo, bo, *, tile_n=256, tile_v=2048):
    N, H = x2d.shape
    V = wo.shape[-1]
    tn = min(tile_n, _round_up(N, 8))
    tv = min(tile_v, _round_up(V, 128))
    Np, Vp = _round_up(N, tn), _round_up(V, tv)
    xp = jnp.pad(x2d, ((0, Np - N), (0, 0))) if Np != N else x2d
    wop = jnp.pad(wo, ((0, 0), (0, Vp - V))) if Vp != V else wo
    bop = jnp.pad(bo, ((0, 0), (0, Vp - V))) if Vp != V else bo
    out = pl.pallas_call(
        _out_proj_kernel,
        out_shape=jax.ShapeDtypeStruct((Np, Vp), jnp.float32),
        grid=(Np // tn, Vp // tv),
        in_specs=[pl.BlockSpec((tn, H), lambda i, j: (i, 0)),
                  pl.BlockSpec((H, tv), lambda i, j: (0, j)),
                  pl.BlockSpec((1, tv), lambda i, j: (0, j))],
        out_specs=pl.BlockSpec((tn, tv), lambda i, j: (i, j)),
        compiler_params=pltpu.CompilerParams(
            dimension_semantics=("parallel", "parallel")),
    )(xp, wop, bop)
    return out[:N, :V]


# --------------------------------------------------------------------------
# Model glue (plain JAX): embeddings, hoisted gx einsums, layer stacking.
# --------------------------------------------------------------------------
def encoder_forward(ep, emb_seq, *, fused, w_dtype):
    l0, l1 = ep['l0'], ep['l1']
    H = l0['wih_g'].shape[-1]

    # layer 0: hoist input-to-hidden gates for both directions at once
    gx0 = (jnp.einsum('tbi,dgih->dtgbh', emb_seq, l0['wih_g'])
           + l0['bih_g'][:, None])
    out0, h0 = bigru_layer(gx0, l0['whh_g'], l0['bhh_g'], fused=fused, w_dtype=w_dtype)
    out0f, out0b = out0[0], out0[1]

    # layer 1: avoid concat(out0f, out0b) -- split wih rows and sum
    w1 = l1['wih_g']                                        # (2, 3, 2H, H)
    gx1 = (jnp.einsum('tbi,dgih->dtgbh', out0f, w1[:, :, :H, :])
           + jnp.einsum('tbi,dgih->dtgbh', out0b, w1[:, :, H:, :])
           + l1['bih_g'][:, None])
    out1, h1 = bigru_layer(gx1, l1['whh_g'], l1['bhh_g'], fused=fused, w_dtype=w_dtype)

    enc_out = out1[0] + out1[1]                             # fwd + bwd sum (module)
    hidden = jnp.concatenate([h0, h1], axis=0)              # [l0f, l0b, l1f, l1b]
    return enc_out, hidden


def seq2seq_forward(kp, input_tokens, input_lengths, answer_seq, lexical_seq,
                    output_tokens, teacher_forcing_ratio=1.0):
    # teacher_forcing_ratio == 1.0 => random.random() < 1.0 always teacher-forces.
    assert teacher_forcing_ratio >= 1.0, "only full teacher forcing implemented"
    fused, wd = kp['fused'], kp['w_dtype']

    word_e = kp['embedding'][input_tokens]                  # (L_in, B, E)
    ans_e = kp['answer_embedding'][answer_seq]              # (L_a, B, E)
    lex_e = kp['lexical_embedding'][lexical_seq]            # (L_l, B, E)
    final_e = jnp.concatenate([word_e, ans_e, lex_e], axis=0)

    # TODO(synk): Python int on purpose -- not jittable with traced lengths.
    max_len = int(max(input_lengths))
    # TODO(synk): per-element pack_padded_sequence masking not implemented;
    # assumes all input_lengths equal max_len (packed GRU == GRU on the prefix).
    emb = final_e[:max_len]

    T_out, B = output_tokens.shape
    Bp = max(8, _round_up(B, 8))        # fill all 8 sublanes / unmasked stores
    if Bp != B:
        emb = jnp.pad(emb, ((0, 0), (0, Bp - B), (0, 0)))

    enc_out, hidden = encoder_forward(kp['encoder'], emb, fused=fused, w_dtype=wd)
    h0, h1 = hidden[0], hidden[1]                           # hidden[:n_layers]

    # lane-dense attention operands, computed once
    enc_blh = jnp.transpose(enc_out, (1, 0, 2)).astype(wd)  # (Bp, L, H)
    keep = input_tokens[:max_len] != PAD_IDX                # (L, B)
    mask_bias = jnp.where(keep, 0.0, -1e10).astype(jnp.float32).T   # (B, L)
    if Bp != B:
        mask_bias = jnp.pad(mask_bias, ((0, Bp - B), (0, 0)))

    dp = kp['decoder']
    Tdec = T_out - 1
    H = h0.shape[-1]
    V = dp['wo'].shape[-1]

    # teacher-forced inputs are known ahead of time: gather embeddings and
    # hoist the layer-0 input-to-hidden gates out of the serial recurrence.
    x_seq = kp['embedding'][output_tokens[:-1]]             # (Tdec, B, E)
    if Bp != B:
        x_seq = jnp.pad(x_seq, ((0, 0), (0, Bp - B), (0, 0)))
    gx0 = jnp.einsum('tbi,gih->tgbh', x_seq, dp['wih0_g']) + dp['bih0_g'][None]

    cat_seq = decoder_loop(gx0, enc_blh, mask_bias, h0, h1, dp,
                           fused=fused, w_dtype=wd)          # (Tdec, Bp, H)

    logits = out_projection(cat_seq.reshape(Tdec * Bp, H), dp['wo'], dp['bo'])
    logits_seq = logits.reshape(Tdec, Bp, V)[:, :B, :]
    outputs = jnp.zeros((T_out, B, V), jnp.float32).at[1:].set(logits_seq)
    return outputs


# --------------------------------------------------------------------------
# Parameter init (PyTorch-equivalent fused layout) + kernel-ready repacking.
# --------------------------------------------------------------------------
def init_params(key, vocab_size, embedding_size, hidden_size):
    E, H, V = embedding_size, hidden_size, vocab_size
    keys = iter(jax.random.split(key, 64))

    def u(shape, scale):
        return jax.random.uniform(next(keys), shape, jnp.float32, -scale, scale)

    def gru_dir(in_size):
        s = 1.0 / (H ** 0.5)
        return dict(wih=u((in_size, 3 * H), s), whh=u((H, 3 * H), s),
                    bih=u((1, 3 * H), s), bhh=u((1, 3 * H), s))

    emb = 0.1 * jax.random.normal(next(keys), (V, E), jnp.float32)
    ans_emb = 0.1 * jax.random.normal(next(keys), (6, E), jnp.float32)
    ans_emb = ans_emb.at[1].set(0.0)                        # padding_idx=1
    lex_emb = 0.1 * jax.random.normal(next(keys), (452, E), jnp.float32)
    lex_emb = lex_emb.at[1].set(0.0)                        # padding_idx=1

    encoder = dict(l0f=gru_dir(E), l0b=gru_dir(E),
                   l1f=gru_dir(2 * H), l1b=gru_dir(2 * H))

    d0, d1 = gru_dir(E), gru_dir(H)
    sc = 1.0 / ((2 * H) ** 0.5)
    so = 1.0 / (H ** 0.5)
    decoder = dict(wih0=d0['wih'], whh0=d0['whh'], bih0=d0['bih'], bhh0=d0['bhh'],
                   wih1=d1['wih'], whh1=d1['whh'], bih1=d1['bih'], bhh1=d1['bhh'],
                   wc=u((2 * H, H), sc), bc=u((1, H), sc),
                   wo=u((H, V), so), bo=u((1, V), so))

    return dict(embedding=emb, answer_embedding=ans_emb, lexical_embedding=lex_emb,
                encoder=encoder, decoder=decoder)


def _split_gate_w(w, H):   # (In, 3H) -> (3, In, H), gate order [r, z, n]
    return jnp.transpose(w.reshape(w.shape[0], 3, H), (1, 0, 2))


def _split_gate_b(b, H):   # (1, 3H) -> (3, 1, H)
    return jnp.transpose(b.reshape(1, 3, H), (1, 0, 2))


def prepare_params(params, H, *, matmul_dtype=jnp.float32):
    """Repack PyTorch-layout params into kernel-ready layouts.

    In-kernel recurrent weights stay fused as (In, 3H) slabs when H % 128 == 0
    (lane-aligned r/z/n slices, 1 MXU issue per gate set); otherwise they are
    split per-gate (3, In, H).  Matmul operands are stored as `matmul_dtype`
    (e.g. bf16); biases / elementwise operands stay f32.
    """
    fused = (H % 128 == 0)
    wd = matmul_dtype

    def rec_w(w):
        return w.astype(wd) if fused else _split_gate_w(w, H).astype(wd)

    def rec_b(b):
        return b if fused else _split_gate_b(b, H)

    enc = params['encoder']

    def dir_pack(lf, lb):
        return dict(
            wih_g=jnp.stack([_split_gate_w(lf['wih'], H), _split_gate_w(lb['wih'], H)]),
            bih_g=jnp.stack([_split_gate_b(lf['bih'], H), _split_gate_b(lb['bih'], H)]),
            whh_g=jnp.stack([rec_w(lf['whh']), rec_w(lb['whh'])]),
            bhh_g=jnp.stack([rec_b(lf['bhh']), rec_b(lb['bhh'])]),
        )

    enc_k = dict(l0=dir_pack(enc['l0f'], enc['l0b']),
                 l1=dir_pack(enc['l1f'], enc['l1b']))

    d = params['decoder']
    dec_k = dict(
        wih0_g=_split_gate_w(d['wih0'], H), bih0_g=_split_gate_b(d['bih0'], H),
        whh0=rec_w(d['whh0']), bhh0=rec_b(d['bhh0']),
        wih1=rec_w(d['wih1']), bih1=rec_b(d['bih1']),
        whh1=rec_w(d['whh1']), bhh1=rec_b(d['bhh1']),
        wct=d['wc'][:H].astype(wd), wcb=d['wc'][H:].astype(wd), bc=d['bc'],
        wo=d['wo'].astype(wd), bo=d['bo'],
    )
    return dict(embedding=params['embedding'],
                answer_embedding=params['answer_embedding'],
                lexical_embedding=params['lexical_embedding'],
                encoder=enc_k, decoder=dec_k,
                fused=fused, w_dtype=wd)


# --------------------------------------------------------------------------
# Pure-JAX reference (full teacher forcing, eval mode) for correctness checks.
# --------------------------------------------------------------------------
def _gru_cell_ref(x, h, p):
    H = h.shape[-1]
    gx = x @ p['wih'] + p['bih']
    gh = h @ p['whh'] + p['bhh']
    r = jax.nn.sigmoid(gx[:, :H] + gh[:, :H])
    z = jax.nn.sigmoid(gx[:, H:2 * H] + gh[:, H:2 * H])
    n = jnp.tanh(gx[:, 2 * H:] + r * gh[:, 2 * H:])
    return (1.0 - z) * n + z * h


def _gru_dir_ref(p, xs, reverse):
    B = xs.shape[1]
    H = p['whh'].shape[0]

    def step(h, x):
        hn = _gru_cell_ref(x, h, p)
        return hn, hn

    hT, ys = jax.lax.scan(step, jnp.zeros((B, H), jnp.float32), xs, reverse=reverse)
    return ys, hT


def seq2seq_reference(params, input_tokens, input_lengths, answer_seq,
                      lexical_seq, output_tokens):
    enc = params['encoder']
    d = params['decoder']

    word = params['embedding'][input_tokens]
    ans = params['answer_embedding'][answer_seq]
    lex = params['lexical_embedding'][lexical_seq]
    final = jnp.concatenate([word, ans, lex], axis=0)
    max_len = int(max(input_lengths))
    emb = final[:max_len]

    o0f, h0f = _gru_dir_ref(enc['l0f'], emb, False)
    o0b, h0b = _gru_dir_ref(enc['l0b'], emb, True)
    x1 = jnp.concatenate([o0f, o0b], axis=-1)
    o1f, _ = _gru_dir_ref(enc['l1f'], x1, False)
    o1b, _ = _gru_dir_ref(enc['l1b'], x1, True)
    enc_out = o1f + o1b                                       # (L, B, H)

    h0, h1 = h0f, h0b                                         # hidden[:n_layers]
    mask = (input_tokens[:max_len] != PAD_IDX).T              # (B, L)

    T_out, B = output_tokens.shape
    V = d['wo'].shape[-1]
    l0 = dict(wih=d['wih0'], whh=d['whh0'], bih=d['bih0'], bhh=d['bhh0'])
    l1 = dict(wih=d['wih1'], whh=d['whh1'], bih=d['bih1'], bhh=d['bhh1'])

    outs = [jnp.zeros((B, V), jnp.float32)]
    for t in range(1, T_out):
        x = params['embedding'][output_tokens[t - 1]]
        h0 = _gru_cell_ref(x, h0, l0)
        h1 = _gru_cell_ref(h0, h1, l1)
        scores = jnp.sum(h1[None, :, :] * enc_out, axis=2).T  # (B, L)
        scores = jnp.where(mask, scores, -1e10)
        attn = jax.nn.softmax(scores, axis=1)
        context = jnp.einsum('bl,lbh->bh', attn, enc_out)
        concat_out = jnp.tanh(jnp.concatenate([h1, context], axis=1) @ d['wc'] + d['bc'])
        outs.append(concat_out @ d['wo'] + d['bo'])
    return jnp.stack(outs, axis=0)


# --------------------------------------------------------------------------
if __name__ == "__main__":

    def run_config(name, *, E, H, V, B, L_in, L_a, L_l, T_out, matmul_dtype, rel_tol):
        key = jax.random.PRNGKey(0)
        pkey, k1, k2, k3, k4 = jax.random.split(key, 5)
        params = init_params(pkey, V, E, H)
        kparams = prepare_params(params, H, matmul_dtype=matmul_dtype)

        input_tokens = jax.random.randint(k1, (L_in, B), 4, V, dtype=jnp.int32)
        input_lengths = [L_in] * B
        answer_seq = jax.random.randint(k2, (L_a, B), 0, 6, dtype=jnp.int32)
        lexical_seq = jax.random.randint(k3, (L_l, B), 0, 452, dtype=jnp.int32)
        output_tokens = jax.random.randint(k4, (T_out, B), 4, V, dtype=jnp.int32)
        output_tokens = output_tokens.at[0].set(SOS_IDX)

        out = seq2seq_forward(kparams, input_tokens, input_lengths, answer_seq,
                              lexical_seq, output_tokens, teacher_forcing_ratio=1.0)
        jax.block_until_ready(out)
        assert out.shape == (T_out, B, V), (name, out.shape)
        assert bool(jnp.all(jnp.isfinite(out))), name

        ref = seq2seq_reference(params, input_tokens, input_lengths, answer_seq,
                                lexical_seq, output_tokens)
        num = jnp.sqrt(jnp.sum((out - ref) ** 2))
        den = jnp.sqrt(jnp.sum(ref ** 2)) + 1e-12
        rel = float(num / den)
        assert rel < rel_tol, f"{name}: relative error {rel:.4f} >= {rel_tol}"

    with jax.default_matmul_precision("highest"):
        # per-gate f32 path (H not a multiple of 128)
        run_config("f32/per-gate", E=16, H=32, V=128, B=2,
                   L_in=8, L_a=4, L_l=4, T_out=6,
                   matmul_dtype=jnp.float32, rel_tol=5e-2)
        # fused-slab + bf16 path (H multiple of 128, padded batch, tiled projection)
        run_config("bf16/fused", E=32, H=128, V=512, B=2,
                   L_in=8, L_a=4, L_l=4, T_out=6,
                   matmul_dtype=jnp.bfloat16, rel_tol=1.5e-1)

    print("KERNEL_OK")
</pallas_src>

<mosaic_0001>
module attributes {stable_mosaic.version = 11 : i64} {
  func.func @kernel(%arg0: i32, %arg1: i32, %arg2: memref<1x1x3x8x32xf32, #tpu.memory_space<vmem>>, %arg3: memref<1x3x32x32xf32, #tpu.memory_space<vmem>>, %arg4: memref<1x3x1x32xf32, #tpu.memory_space<vmem>>, %arg5: memref<1x1x8x32xf32, #tpu.memory_space<vmem>>, %arg6: memref<1x8x32xf32, #tpu.memory_space<vmem>>, %arg7: memref<8x32xf32, #tpu.memory_space<vmem>>) attributes {dimension_semantics = [#tpu.dimension_semantics<parallel>, #tpu.dimension_semantics<arbitrary>], iteration_bounds = array<i64: 2, 8>, scalar_prefetch = 0 : i64, scratch_operands = 1 : i64, tpu.core_type = #tpu.core_type<tc>, window_params = [{transform_indices = @transform_0, window_bounds = array<i64: 1, 1, 3, 8, 32>}, {pipeline_mode = #tpu.pipeline_mode<synchronous>, transform_indices = @transform_1, window_bounds = array<i64: 1, 3, 32, 32>}, {pipeline_mode = #tpu.pipeline_mode<synchronous>, transform_indices = @transform_2, window_bounds = array<i64: 1, 3, 1, 32>}, {transform_indices = @transform_3, window_bounds = array<i64: 1, 1, 8, 32>}, {transform_indices = @transform_4, window_bounds = array<i64: 1, 8, 32>}]} {
    %c0_i32 = arith.constant 0 : i32
    %0 = arith.cmpi eq, %arg1, %c0_i32 : i32
    %1 = arith.extui %0 : i1 to i32
    %c0_i32_0 = arith.constant 0 : i32
    %2 = arith.cmpi ne, %1, %c0_i32_0 : i32
    scf.if %2 {
      %cst_51 = arith.constant 0.000000e+00 : f32
      %58 = vector.broadcast %cst_51 : f32 to vector<8x32xf32>
      %c0_52 = arith.constant 0 : index
      %c0_53 = arith.constant 0 : index
      %59 = vector.load %arg7[%c0_52, %c0_53] : memref<8x32xf32, #tpu.memory_space<vmem>>, vector<8x32xf32>
      tpu.vector_store %arg7[%c0_52, %c0_53], %58 {strides = array<i32>} : memref<8x32xf32, #tpu.memory_space<vmem>>, vector<8x32xf32>,
    } else {
    }
    %c0 = arith.constant 0 : index
    %c0_1 = arith.constant 0 : index
    %3 = vector.load %arg7[%c0, %c0_1] : memref<8x32xf32, #tpu.memory_space<vmem>>, vector<8x32xf32>
    %c0_2 = arith.constant 0 : index
    %c0_3 = arith.constant 0 : index
    %c0_4 = arith.constant 0 : index
    %c0_5 = arith.constant 0 : index
    %4 = vector.load %arg3[%c0_2, %c0_3, %c0_4, %c0_5] : memref<1x3x32x32xf32, #tpu.memory_space<vmem>>, vector<1x1x32x32xf32>
    %5 = vector.shape_cast %4 : vector<1x1x32x32xf32> to vector<32x32xf32>
    %cst = arith.constant dense<0.000000e+00> : vector<8x32xf32>
    %6 = tpu.matmul %3, %5, %cst {dimension_numbers = #tpu.dot_dimension_numbers<[1], [0], [0], [1], [0, 0, 1, 1], [], []>, precision = #tpu.contract_precision<fp32>} : vector<8x32xf32>, vector<32x32xf32>, vector<8x32xf32> -> vector<8x32xf32>
    %c0_6 = arith.constant 0 : index
    %c0_7 = arith.constant 0 : index
    %c0_8 = arith.constant 0 : index
    %c0_9 = arith.constant 0 : index
    %7 = vector.load %arg4[%c0_6, %c0_7, %c0_8, %c0_9] : memref<1x3x1x32xf32, #tpu.memory_space<vmem>>, vector<1x1x1x32xf32>
    %8 = vector.shape_cast %7 : vector<1x1x1x32xf32> to vector<1x32xf32>
    %9 = vector.broadcast %8 : vector<1x32xf32> to vector<8x32xf32>
    %10 = arith.addf %6, %9 : vector<8x32xf32>
    %c0_10 = arith.constant 0 : index
    %c1 = arith.constant 1 : index
    %c0_11 = arith.constant 0 : index
    %c0_12 = arith.constant 0 : index
    %11 = vector.load %arg3[%c0_10, %c1, %c0_11, %c0_12] : memref<1x3x32x32xf32, #tpu.memory_space<vmem>>, vector<1x1x32x32xf32>
    %12 = vector.shape_cast %11 : vector<1x1x32x32xf32> to vector<32x32xf32>
    %cst_13 = arith.constant dense<0.000000e+00> : vector<8x32xf32>
    %13 = tpu.matmul %3, %12, %cst_13 {dimension_numbers = #tpu.dot_dimension_numbers<[1], [0], [0], [1], [0, 0, 1, 1], [], []>, precision = #tpu.contract_precision<fp32>} : vector<8x32xf32>, vector<32x32xf32>, vector<8x32xf32> -> vector<8x32xf32>
    %c0_14 = arith.constant 0 : index
    %c1_15 = arith.constant 1 : index
    %c0_16 = arith.constant 0 : index
    %c0_17 = arith.constant 0 : index
    %14 = vector.load %arg4[%c0_14, %c1_15, %c0_16, %c0_17] : memref<1x3x1x32xf32, #tpu.memory_space<vmem>>, vector<1x1x1x32xf32>
    %15 = vector.shape_cast %14 : vector<1x1x1x32xf32> to vector<1x32xf32>
    %16 = vector.broadcast %15 : vector<1x32xf32> to vector<8x32xf32>
    %17 = arith.addf %13, %16 : vector<8x32xf32>
    %c0_18 = arith.constant 0 : index
    %c2 = arith.constant 2 : index
    %c0_19 = arith.constant 0 : index
    %c0_20 = arith.constant 0 : index
    %18 = vector.load %arg3[%c0_18, %c2, %c0_19, %c0_20] : memref<1x3x32x32xf32, #tpu.memory_space<vmem>>, vector<1x1x32x32xf32>
    %19 = vector.shape_cast %18 : vector<1x1x32x32xf32> to vector<32x32xf32>
    %cst_21 = arith.constant dense<0.000000e+00> : vector<8x32xf32>
    %20 = tpu.matmul %3, %19, %cst_21 {dimension_numbers = #tpu.dot_dimension_numbers<[1], [0], [0], [1], [0, 0, 1, 1], [], []>, precision = #tpu.contract_precision<fp32>} : vector<8x32xf32>, vector<32x32xf32>, vector<8x32xf32> -> vector<8x32xf32>
    %c0_22 = arith.constant 0 : index
    %c2_23 = arith.constant 2 : index
    %c0_24 = arith.constant 0 : index
    %c0_25 = arith.constant 0 : index
    %21 = vector.load %arg4[%c0_22, %c2_23, %c0_24, %c0_25] : memref<1x3x1x32xf32, #tpu.memory_space<vmem>>, vector<1x1x1x32xf32>
    %22 = vector.shape_cast %21 : vector<1x1x1x32xf32> to vector<1x32xf32>
    %23 = vector.broadcast %22 : vector<1x32xf32> to vector<8x32xf32>
    %24 = arith.addf %20, %23 : vector<8x32xf32>
    %c0_26 = arith.constant 0 : index
    %c0_27 = arith.constant 0 : index
    %c0_28 = arith.constant 0 : index
    %c0_29 = arith.constant 0 : index
    %c0_30 = arith.constant 0 : index
    %25 = vector.load %arg2[%c0_26, %c0_27, %c0_28, %c0_29, %c0_30] : memref<1x1x3x8x32xf32, #tpu.memory_space<vmem>>, vector<1x1x1x8x32xf32>
    %26 = vector.shape_cast %25 : vector<1x1x1x8x32xf32> to vector<8x32xf32>
    %27 = arith.addf %26, %10 : vector<8x32xf32>
    %28 = arith.negf %27 : vector<8x32xf32>
    %29 = math.exp %28 : vector<8x32xf32>
    %cst_31 = arith.constant 1.000000e+00 : f32
    %30 = vector.broadcast %cst_31 : f32 to vector<8x32xf32>
    %31 = arith.addf %30, %29 : vector<8x32xf32>
    %32 = arith.divf %30, %31 : vector<8x32xf32>
    %c0_32 = arith.constant 0 : index
    %c0_33 = arith.constant 0 : index
    %c1_34 = arith.constant 1 : index
    %c0_35 = arith.constant 0 : index
    %c0_36 = arith.constant 0 : index
    %33 = vector.load %arg2[%c0_32, %c0_33, %c1_34, %c0_35, %c0_36] : memref<1x1x3x8x32xf32, #tpu.memory_space<vmem>>, vector<1x1x1x8x32xf32>
    %34 = vector.shape_cast %33 : vector<1x1x1x8x32xf32> to vector<8x32xf32>
    %35 = arith.addf %34, %17 : vector<8x32xf32>
    %36 = arith.negf %35 : vector<8x32xf32>
    %37 = math.exp %36 : vector<8x32xf32>
    %cst_37 = arith.constant 1.000000e+00 : f32
    %38 = vector.broadcast %cst_37 : f32 to vector<8x32xf32>
    %39 = arith.addf %38, %37 : vector<8x32xf32>
    %40 = arith.divf %38, %39 : vector<8x32xf32>
    %c0_38 = arith.constant 0 : index
    %c0_39 = arith.constant 0 : index
    %c2_40 = arith.constant 2 : index
    %c0_41 = arith.constant 0 : index
    %c0_42 = arith.constant 0 : index
    %41 = vector.load %arg2[%c0_38, %c0_39, %c2_40, %c0_41, %c0_42] : memref<1x1x3x8x32xf32, #tpu.memory_space<vmem>>, vector<1x1x1x8x32xf32>
    %42 = vector.shape_cast %41 : vector<1x1x1x8x32xf32> to vector<8x32xf32>
    %43 = arith.mulf %32, %24 : vector<8x32xf32>
    %44 = arith.addf %42, %43 : vector<8x32xf32>
    %45 = math.tanh %44 : vector<8x32xf32>
    %cst_43 = arith.constant 1.000000e+00 : f32
    %46 = vector.broadcast %cst_43 : f32 to vector<8x32xf32>
    %47 = arith.subf %46, %40 : vector<8x32xf32>
    %48 = arith.mulf %47, %45 : vector<8x32xf32>
    %49 = arith.mulf %40, %3 : vector<8x32xf32>
    %50 = arith.addf %48, %49 : vector<8x32xf32>
    %c0_44 = arith.constant 0 : index
    %c0_45 = arith.constant 0 : index
    %51 = vector.load %arg7[%c0_44, %c0_45] : memref<8x32xf32, #tpu.memory_space<vmem>>, vector<8x32xf32>
    tpu.vector_store %arg7[%c0_44, %c0_45], %50 {strides = array<i32>} : memref<8x32xf32, #tpu.memory_space<vmem>>, vector<8x32xf32>,
    %c0_46 = arith.constant 0 : index
    %c0_47 = arith.constant 0 : index
    %c0_48 = arith.constant 0 : index
    %c0_49 = arith.constant 0 : index
    %52 = vector.load %arg5[%c0_46, %c0_47, %c0_48, %c0_49] : memref<1x1x8x32xf32, #tpu.memory_space<vmem>>, vector<1x1x8x32xf32>
    %53 = vector.shape_cast %52 : vector<1x1x8x32xf32> to vector<8x32xf32>
    %54 = vector.shape_cast %50 : vector<8x32xf32> to vector<1x1x8x32xf32>
    tpu.vector_store %arg5[%c0_46, %c0_47, %c0_48, %c0_49], %54 {strides = array<i32>} : memref<1x1x8x32xf32, #tpu.memory_space<vmem>>, vector<1x1x8x32xf32>,
    %c7_i32 = arith.constant 7 : i32
    %55 = arith.cmpi eq, %arg1, %c7_i32 : i32
    %56 = arith.extui %55 : i1 to i32
    %c0_i32_50 = arith.constant 0 : i32
    %57 = arith.cmpi ne, %56, %c0_i32_50 : i32
    scf.if %57 {
      %c0_51 = arith.constant 0 : index
      %c0_52 = arith.constant 0 : index
      %c0_53 = arith.constant 0 : index
      %58 = vector.load %arg6[%c0_51, %c0_52, %c0_53] : memref<1x8x32xf32, #tpu.memory_space<vmem>>, vector<1x8x32xf32>
      %59 = vector.shape_cast %58 : vector<1x8x32xf32> to vector<8x32xf32>
      %60 = vector.shape_cast %50 : vector<8x32xf32> to vector<1x8x32xf32>
      tpu.vector_store %arg6[%c0_51, %c0_52, %c0_53], %60 {strides = array<i32>} : memref<1x8x32xf32, #tpu.memory_space<vmem>>, vector<1x8x32xf32>,
    } else {
    }
    return
  }
  func.func @transform_0(%arg0: i32, %arg1: i32) -> (i32, i32, i32, i32, i32) {
    %c2_i32 = arith.constant 2 : i32
    %0 = arith.muli %c2_i32, %arg0 : i32
    %c1_i32 = arith.constant 1 : i32
    %1 = arith.subi %c1_i32, %0 : i32
    %2 = arith.muli %arg1, %1 : i32
    %c7_i32 = arith.constant 7 : i32
    %3 = arith.muli %arg0, %c7_i32 : i32
    %4 = arith.addi %2, %3 : i32
    %c0_i32 = arith.constant 0 : i32
    %c0_i32_0 = arith.constant 0 : i32
    %c0_i32_1 = arith.constant 0 : i32
    %c0_i32_2 = arith.constant 0 : i32
    return %arg0, %4, %c0_i32, %c0_i32_0, %c0_i32_1 : i32, i32, i32, i32, i32
  }
  func.func @transform_1(%arg0: i32, %arg1: i32) -> (i32, i32, i32, i32) {
    %c0_i32 = arith.constant 0 : i32
    %c0_i32_0 = arith.constant 0 : i32
    %c0_i32_1 = arith.constant 0 : i32
    %c0_i32_2 = arith.constant 0 : i32
    return %arg0, %c0_i32, %c0_i32_0, %c0_i32_1 : i32, i32, i32, i32
  }
  func.func @transform_2(%arg0: i32, %arg1: i32) -> (i32, i32, i32, i32) {
    %c0_i32 = arith.constant 0 : i32
    %c0_i32_0 = arith.constant 0 : i32
    %c0_i32_1 = arith.constant 0 : i32
    %c0_i32_2 = arith.constant 0 : i32
    return %arg0, %c0_i32, %c0_i32_0, %c0_i32_1 : i32, i32, i32, i32
  }
  func.func @transform_3(%arg0: i32, %arg1: i32) -> (i32, i32, i32, i32) {
    %c2_i32 = arith.constant 2 : i32
    %0 = arith.muli %c2_i32, %arg0 : i32
    %c1_i32 = arith.constant 1 : i32
    %1 = arith.subi %c1_i32, %0 : i32
    %2 = arith.muli %arg1, %1 : i32
    %c7_i32 = arith.constant 7 : i32
    %3 = arith.muli %arg0, %c7_i32 : i32
    %4 = arith.addi %2, %3 : i32
    %c0_i32 = arith.constant 0 : i32
    %c0_i32_0 = arith.constant 0 : i32
    %c0_i32_1 = arith.constant 0 : i32
    return %arg0, %4, %c0_i32, %c0_i32_0 : i32, i32, i32, i32
  }
  func.func @transform_4(%arg0: i32, %arg1: i32) -> (i32, i32, i32) {
    %c0_i32 = arith.constant 0 : i32
    %c0_i32_0 = arith.constant 0 : i32
    %c0_i32_1 = arith.constant 0 : i32
    return %arg0, %c0_i32, %c0_i32_0 : i32, i32, i32
  }
}

module attributes {stable_mosaic.version = 11 : i64} {
  func.func @kernel(%arg0: i32, %arg1: i32, %arg2: memref<1x1x3x8x32xf32, #tpu.memory_space<vmem>>, %arg3: memref<1x3x32x32xf32, #tpu.memory_space<vmem>>, %arg4: memref<1x3x1x32xf32, #tpu.memory_space<vmem>>, %arg5: memref<1x1x8x32xf32, #tpu.memory_space<vmem>>, %arg6: memref<1x8x32xf32, #tpu.memory_space<vmem>>, %arg7: memref<8x32xf32, #tpu.memory_space<vmem>>) attributes {dimension_semantics = [#tpu.dimension_semantics<parallel>, #tpu.dimension_semantics<arbitrary>], iteration_bounds = array<i64: 2, 8>, scalar_prefetch = 0 : i64, scratch_operands = 1 : i64, tpu.core_type = #tpu.core_type<tc>, window_params = [{transform_indices = @transform_0, window_bounds = array<i64: 1, 1, 3, 8, 32>}, {transform_indices = @transform_1, window_bounds = array<i64: 1, 3, 32, 32>}, {transform_indices = @transform_2, window_bounds = array<i64: 1, 3, 1, 32>}, {transform_indices = @transform_3, window_bounds = array<i64: 1, 1, 8, 32>}, {transform_indices = @transform_4, window_bounds = array<i64: 1, 8, 32>}]} {
    %c0_i32 = arith.constant 0 : i32
    %0 = arith.cmpi eq, %arg1, %c0_i32 : i32
    %1 = arith.extui %0 : i1 to i32
    %c0_i32_0 = arith.constant 0 : i32
    %2 = arith.cmpi ne, %1, %c0_i32_0 : i32
    scf.if %2 {
      %cst_51 = arith.constant 0.000000e+00 : f32
      %58 = vector.broadcast %cst_51 : f32 to vector<8x32xf32>
      %c0_52 = arith.constant 0 : index
      %c0_53 = arith.constant 0 : index
      %59 = vector.load %arg7[%c0_52, %c0_53] : memref<8x32xf32, #tpu.memory_space<vmem>>, vector<8x32xf32>
      tpu.vector_store %arg7[%c0_52, %c0_53], %58 {strides = array<i32>} : memref<8x32xf32, #tpu.memory_space<vmem>>, vector<8x32xf32>,
    } else {
    }
    %c0 = arith.constant 0 : index
    %c0_1 = arith.constant 0 : index
    %3 = vector.load %arg7[%c0, %c0_1] : memref<8x32xf32, #tpu.memory_space<vmem>>, vector<8x32xf32>
    %c0_2 = arith.constant 0 : index
    %c0_3 = arith.constant 0 : index
    %c0_4 = arith.constant 0 : index
    %c0_5 = arith.constant 0 : index
    %4 = vector.load %arg3[%c0_2, %c0_3, %c0_4, %c0_5] : memref<1x3x32x32xf32, #tpu.memory_space<vmem>>, vector<1x1x32x32xf32>
    %5 = vector.shape_cast %4 : vector<1x1x32x32xf32> to vector<32x32xf32>
    %cst = arith.constant dense<0.000000e+00> : vector<8x32xf32>
    %6 = tpu.matmul %3, %5, %cst {dimension_numbers = #tpu.dot_dimension_numbers<[1], [0], [0], [1], [0, 0, 1, 1], [], []>, precision = #tpu.contract_precision<fp32>} : vector<8x32xf32>, vector<32x32xf32>, vector<8x32xf32> -> vector<8x32xf32>
    %c0_6 = arith.constant 0 : index
    %c0_7 = arith.constant 0 : index
    %c0_8 = arith.constant 0 : index
    %c0_9 = arith.constant 0 : index
    %7 = vector.load %arg4[%c0_6, %c0_7, %c0_8, %c0_9] : memref<1x3x1x32xf32, #tpu.memory_space<vmem>>, vector<1x1x1x32xf32>
    %8 = vector.shape_cast %7 : vector<1x1x1x32xf32> to vector<1x32xf32>
    %9 = vector.broadcast %8 : vector<1x32xf32> to vector<8x32xf32>
    %10 = arith.addf %6, %9 : vector<8x32xf32>
    %c0_10 = arith.constant 0 : index
    %c1 = arith.constant 1 : index
    %c0_11 = arith.constant 0 : index
    %c0_12 = arith.constant 0 : index
    %11 = vector.load %arg3[%c0_10, %c1, %c0_11, %c0_12] : memref<1x3x32x32xf32, #tpu.memory_space<vmem>>, vector<1x1x32x32xf32>
    %12 = vector.shape_cast %11 : vector<1x1x32x32xf32> to vector<32x32xf32>
    %cst_13 = arith.constant dense<0.000000e+00> : vector<8x32xf32>
    %13 = tpu.matmul %3, %12, %cst_13 {dimension_numbers = #tpu.dot_dimension_numbers<[1], [0], [0], [1], [0, 0, 1, 1], [], []>, precision = #tpu.contract_precision<fp32>} : vector<8x32xf32>, vector<32x32xf32>, vector<8x32xf32> -> vector<8x32xf32>
    %c0_14 = arith.constant 0 : index
    %c1_15 = arith.constant 1 : index
    %c0_16 = arith.constant 0 : index
    %c0_17 = arith.constant 0 : index
    %14 = vector.load %arg4[%c0_14, %c1_15, %c0_16, %c0_17] : memref<1x3x1x32xf32, #tpu.memory_space<vmem>>, vector<1x1x1x32xf32>
    %15 = vector.shape_cast %14 : vector<1x1x1x32xf32> to vector<1x32xf32>
    %16 = vector.broadcast %15 : vector<1x32xf32> to vector<8x32xf32>
    %17 = arith.addf %13, %16 : vector<8x32xf32>
    %c0_18 = arith.constant 0 : index
    %c2 = arith.constant 2 : index
    %c0_19 = arith.constant 0 : index
    %c0_20 = arith.constant 0 : index
    %18 = vector.load %arg3[%c0_18, %c2, %c0_19, %c0_20] : memref<1x3x32x32xf32, #tpu.memory_space<vmem>>, vector<1x1x32x32xf32>
    %19 = vector.shape_cast %18 : vector<1x1x32x32xf32> to vector<32x32xf32>
    %cst_21 = arith.constant dense<0.000000e+00> : vector<8x32xf32>
    %20 = tpu.matmul %3, %19, %cst_21 {dimension_numbers = #tpu.dot_dimension_numbers<[1], [0], [0], [1], [0, 0, 1, 1], [], []>, precision = #tpu.contract_precision<fp32>} : vector<8x32xf32>, vector<32x32xf32>, vector<8x32xf32> -> vector<8x32xf32>
    %c0_22 = arith.constant 0 : index
    %c2_23 = arith.constant 2 : index
    %c0_24 = arith.constant 0 : index
    %c0_25 = arith.constant 0 : index
    %21 = vector.load %arg4[%c0_22, %c2_23, %c0_24, %c0_25] : memref<1x3x1x32xf32, #tpu.memory_space<vmem>>, vector<1x1x1x32xf32>
    %22 = vector.shape_cast %21 : vector<1x1x1x32xf32> to vector<1x32xf32>
    %23 = vector.broadcast %22 : vector<1x32xf32> to vector<8x32xf32>
    %24 = arith.addf %20, %23 : vector<8x32xf32>
    %c0_26 = arith.constant 0 : index
    %c0_27 = arith.constant 0 : index
    %c0_28 = arith.constant 0 : index
    %c0_29 = arith.constant 0 : index
    %c0_30 = arith.constant 0 : index
    %25 = vector.load %arg2[%c0_26, %c0_27, %c0_28, %c0_29, %c0_30] : memref<1x1x3x8x32xf32, #tpu.memory_space<vmem>>, vector<1x1x1x8x32xf32>
    %26 = vector.shape_cast %25 : vector<1x1x1x8x32xf32> to vector<8x32xf32>
    %27 = arith.addf %26, %10 : vector<8x32xf32>
    %28 = arith.negf %27 : vector<8x32xf32>
    %29 = math.exp %28 : vector<8x32xf32>
    %cst_31 = arith.constant 1.000000e+00 : f32
    %30 = vector.broadcast %cst_31 : f32 to vector<8x32xf32>
    %31 = arith.addf %30, %29 : vector<8x32xf32>
    %32 = arith.divf %30, %31 : vector<8x32xf32>
    %c0_32 = arith.constant 0 : index
    %c0_33 = arith.constant 0 : index
    %c1_34 = arith.constant 1 : index
    %c0_35 = arith.constant 0 : index
    %c0_36 = arith.constant 0 : index
    %33 = vector.load %arg2[%c0_32, %c0_33, %c1_34, %c0_35, %c0_36] : memref<1x1x3x8x32xf32, #tpu.memory_space<vmem>>, vector<1x1x1x8x32xf32>
    %34 = vector.shape_cast %33 : vector<1x1x1x8x32xf32> to vector<8x32xf32>
    %35 = arith.addf %34, %17 : vector<8x32xf32>
    %36 = arith.negf %35 : vector<8x32xf32>
    %37 = math.exp %36 : vector<8x32xf32>
    %cst_37 = arith.constant 1.000000e+00 : f32
    %38 = vector.broadcast %cst_37 : f32 to vector<8x32xf32>
    %39 = arith.addf %38, %37 : vector<8x32xf32>
    %40 = arith.divf %38, %39 : vector<8x32xf32>
    %c0_38 = arith.constant 0 : index
    %c0_39 = arith.constant 0 : index
    %c2_40 = arith.constant 2 : index
    %c0_41 = arith.constant 0 : index
    %c0_42 = arith.constant 0 : index
    %41 = vector.load %arg2[%c0_38, %c0_39, %c2_40, %c0_41, %c0_42] : memref<1x1x3x8x32xf32, #tpu.memory_space<vmem>>, vector<1x1x1x8x32xf32>
    %42 = vector.shape_cast %41 : vector<1x1x1x8x32xf32> to vector<8x32xf32>
    %43 = arith.mulf %32, %24 : vector<8x32xf32>
    %44 = arith.addf %42, %43 : vector<8x32xf32>
    %45 = math.tanh %44 : vector<8x32xf32>
    %cst_43 = arith.constant 1.000000e+00 : f32
    %46 = vector.broadcast %cst_43 : f32 to vector<8x32xf32>
    %47 = arith.subf %46, %40 : vector<8x32xf32>
    %48 = arith.mulf %47, %45 : vector<8x32xf32>
    %49 = arith.mulf %40, %3 : vector<8x32xf32>
    %50 = arith.addf %48, %49 : vector<8x32xf32>
    %c0_44 = arith.constant 0 : index
    %c0_45 = arith.constant 0 : index
    %51 = vector.load %arg7[%c0_44, %c0_45] : memref<8x32xf32, #tpu.memory_space<vmem>>, vector<8x32xf32>
    tpu.vector_store %arg7[%c0_44, %c0_45], %50 {strides = array<i32>} : memref<8x32xf32, #tpu.memory_space<vmem>>, vector<8x32xf32>,
    %c0_46 = arith.constant 0 : index
    %c0_47 = arith.constant 0 : index
    %c0_48 = arith.constant 0 : index
    %c0_49 = arith.constant 0 : index
    %52 = vector.load %arg5[%c0_46, %c0_47, %c0_48, %c0_49] : memref<1x1x8x32xf32, #tpu.memory_space<vmem>>, vector<1x1x8x32xf32>
    %53 = vector.shape_cast %52 : vector<1x1x8x32xf32> to vector<8x32xf32>
    %54 = vector.shape_cast %50 : vector<8x32xf32> to vector<1x1x8x32xf32>
    tpu.vector_store %arg5[%c0_46, %c0_47, %c0_48, %c0_49], %54 {strides = array<i32>} : memref<1x1x8x32xf32, #tpu.memory_space<vmem>>, vector<1x1x8x32xf32>,
    %c7_i32 = arith.constant 7 : i32
    %55 = arith.cmpi eq, %arg1, %c7_i32 : i32
    %56 = arith.extui %55 : i1 to i32
    %c0_i32_50 = arith.constant 0 : i32
    %57 = arith.cmpi ne, %56, %c0_i32_50 : i32
    scf.if %57 {
      %c0_51 = arith.constant 0 : index
      %c0_52 = arith.constant 0 : index
      %c0_53 = arith.constant 0 : index
      %58 = vector.load %arg6[%c0_51, %c0_52, %c0_53] : memref<1x8x32xf32, #tpu.memory_space<vmem>>, vector<1x8x32xf32>
      %59 = vector.shape_cast %58 : vector<1x8x32xf32> to vector<8x32xf32>
      %60 = vector.shape_cast %50 : vector<8x32xf32> to vector<1x8x32xf32>
      tpu.vector_store %arg6[%c0_51, %c0_52, %c0_53], %60 {strides = array<i32>} : memref<1x8x32xf32, #tpu.memory_space<vmem>>, vector<1x8x32xf32>,
    } else {
    }
    return
  }
  func.func @transform_0(%arg0: i32, %arg1: i32) -> (i32, i32, i32, i32, i32) {
    %c2_i32 = arith.constant 2 : i32
    %0 = arith.muli %c2_i32, %arg0 : i32
    %c1_i32 = arith.constant 1 : i32
    %1 = arith.subi %c1_i32, %0 : i32
    %2 = arith.muli %arg1, %1 : i32
    %c7_i32 = arith.constant 7 : i32
    %3 = arith.muli %arg0, %c7_i32 : i32
    %4 = arith.addi %2, %3 : i32
    %c0_i32 = arith.constant 0 : i32
    %c0_i32_0 = arith.constant 0 : i32
    %c0_i32_1 = arith.constant 0 : i32
    %c0_i32_2 = arith.constant 0 : i32
    return %arg0, %4, %c0_i32, %c0_i32_0, %c0_i32_1 : i32, i32, i32, i32, i32
  }
  func.func @transform_1(%arg0: i32, %arg1: i32) -> (i32, i32, i32, i32) {
    %c0_i32 = arith.constant 0 : i32
    %c0_i32_0 = arith.constant 0 : i32
    %c0_i32_1 = arith.constant 0 : i32
    %c0_i32_2 = arith.constant 0 : i32
    return %arg0, %c0_i32, %c0_i32_0, %c0_i32_1 : i32, i32, i32, i32
  }
  func.func @transform_2(%arg0: i32, %arg1: i32) -> (i32, i32, i32, i32) {
    %c0_i32 = arith.constant 0 : i32
    %c0_i32_0 = arith.constant 0 : i32
    %c0_i32_1 = arith.constant 0 : i32
    %c0_i32_2 = arith.constant 0 : i32
    return %arg0, %c0_i32, %c0_i32_0, %c0_i32_1 : i32, i32, i32, i32
  }
  func.func @transform_3(%arg0: i32, %arg1: i32) -> (i32, i32, i32, i32) {
    %c2_i32 = arith.constant 2 : i32
    %0 = arith.muli %c2_i32, %arg0 : i32
    %c1_i32 = arith.constant 1 : i32
    %1 = arith.subi %c1_i32, %0 : i32
    %2 = arith.muli %arg1, %1 : i32
    %c7_i32 = arith.constant 7 : i32
    %3 = arith.muli %arg0, %c7_i32 : i32
    %4 = arith.addi %2, %3 : i32
    %c0_i32 = arith.constant 0 : i32
    %c0_i32_0 = arith.constant 0 : i32
    %c0_i32_1 = arith.constant 0 : i32
    return %arg0, %4, %c0_i32, %c0_i32_0 : i32, i32, i32, i32
  }
  func.func @transform_4(%arg0: i32, %arg1: i32) -> (i32, i32, i32) {
    %c0_i32 = arith.constant 0 : i32
    %c0_i32_0 = arith.constant 0 : i32
    %c0_i32_1 = arith.constant 0 : i32
    return %arg0, %c0_i32, %c0_i32_0 : i32, i32, i32
  }
}

</mosaic_0001>

<bundles_post_ra>
// kernel: tpu_custom_call.1
= control target key start
LH: loop header
LB: loop body
LE: loop exit
PB: predicated region body
PF: predicated region fallthrough
CT: control target
= control target key end

     0   :  { %s3494_s0 = inlined_call_operand.hbm [shape: f32[2,8,3,8,32], index: 0, kind: input, shape index: {}]   ;;  %s3495_s1 = inlined_call_operand.hbm [shape: f32[2,3,32,32], index: 1, kind: input, shape index: {}]   ;;  %s3496_s2 = inlined_call_operand.vmem [shape: f32[2,3,1,32], index: 2, kind: input, shape index: {}]   ;;  %s3497_s3 = inlined_call_operand.hbm [shape: f32[2,8,8,32], index: 3, kind: output, shape index: {0}]   ;;  %s3498_s4 = inlined_call_operand.hbm [shape: f32[2,8,32], index: 4, kind: output, shape index: {1}]  }
   0x1   :  { %3522 = sst [smem:[#allocation25_spill]] %s3494_s0 }
   0x2   :  { %3523 = sst [smem:[#allocation26_spill]] %s3495_s1 }
   0x3   :  { %3524 = sst [smem:[#allocation27_spill]] %s3497_s3 }
   0x4   :  { %3525 = sst [smem:[#allocation28_spill]] %s3498_s4 }
   0x5   :  { %10 = vsyncpa [#allocation4], 0 }
   0x6   :  { %12 = vsyncpa [#allocation4 + $0x1], 0 }
   0x7   :  { %13 = vsyncpa [#allocation7], 0 }
   0x8   :  { %14 = vsyncpa [#allocation5], 0 }
   0x9   :  { %16 = vsyncpa [#allocation5 + $0x1], 0 }
   0xa   :  { %17 = vsyncpa [#allocation10], 0 }
   0xb   :  { %19 = vsyncpa [#allocation10 + $0x1], 0  ;;  %s2875_s15 = smov 0   ;;  %s2877_s16 = smov 0  }
   0xc   :  { %s2879_s17 = smov 0   ;;  %s2881_s18 = smov 0  }
   0xd   :  { %s2883_s19 = smov 0   ;;  %s2885_s20 = smov 0  }
   0xe   :  { %s2887_s21 = smov 0   ;;  %s2889_s22 = smov 0  }
   0xf   :  { %s2891_s23 = smov 0   ;;  %s2893_s24 = smov 0  }
  0x10   :  { %s2895_s25 = smov 0  }
  0x11 LB: > { %3526 = sst [smem:[#allocation15_spill]] %s2798_s15  ;;  %s2044_s26 = sadd.s32 4294967295, %s2838_s25   ;;  %s2838_s25 = sphi %s2895_s25, %s25_s25   ;;  %s2834_s24 = sphi %s2893_s24, %s3582_s24   ;;  %s2830_s23 = sphi %s2891_s23, %s3572_s23   ;;  %s2826_s22 = sphi %s2889_s22, %s3581_s22   ;;  %s2822_s21 = sphi %s2887_s21, %s3580_s21   ;;  %s2818_s20 = sphi %s2885_s20, %s3579_s20   ;;  %s2814_s19 = sphi %s2883_s19, %s3578_s19   ;;  %s2810_s18 = sphi %s2881_s18, %s3577_s18   ;;  %s2806_s17 = sphi %s2879_s17, %s3576_s17   ;;  %s2802_s16 = sphi %s2877_s16, %s3575_s16   ;;  %s2798_s15 = sphi %s2875_s15, %s3574_s15  }
  0x12   : > { %3527 = sst [smem:[#allocation16_spill]] %s2810_s18  ;;  %s2045_s27 = sadd.s32 4294967294, %s2838_s25  }
  0x13   : > { %3528 = sst [smem:[#allocation17_spill]] %s2822_s21  ;;  %p69_p0 = scmp.ne.s32.totalorder %s2814_s19, %s2810_s18 }
  0x14   : > { %3529 = sst [smem:[#allocation18_spill]] %s2830_s23  ;;  %p70_p1 = scmp.eq.s32.totalorder %s2044_s26, 0 }
  0x15   : > { %p95_p2 = scmp.ne.s32.totalorder %s2802_s16, %s2798_s15  ;;  %p2940_p4 = scmp.eq.s32.totalorder %s2044_s26, 15 }
  0x16   : > { %p2936_p3 = por %p70_p1, %p69_p0  ;;  %p163_p6 = scmp.eq.s32.totalorder %s2045_s27, 15 }
  0x17   : > { %s3531_s29 = scalar_select %p2940_p4, 1, 0 }
  0x18   : > { %s3530_s28 = scalar_select %p2936_p3, 1, 0 }
  0x19   : > { %p2944_p5 = por %p95_p2, %p70_p1  ;;  %p182_p7 = scmp.ne.s32.totalorder %s2806_s17, %s2802_s16 }
  0x1a   : > { %p2050_p8 = scmp.ge.s32.totalorder %s2838_s25, 1  ;;  %p2951_p9 = por %p163_p6, %p69_p0 }
  0x1b   : > { %s3532_s30 = scalar_select %p2944_p5, 1, 0 }
  0x1c   : > { %s3533_s5 = scalar_select %p2951_p9, 1, 0 }
  0x1d   : > { %p2955_p10 = por %p163_p6, %p95_p2  ;;  %p2961_p11 = por %p182_p7, %p2940_p4 }
  0x1e   : > { %3534 = sst [smem:[#allocation19_spill]] %s3533_s5  ;;  %p196_p12 = scmp.lt.s32.totalorder %s2838_s25, 17 }
  0x1f   : > { %s3535_s6 = scalar_select %p2955_p10, 1, 0 }
  0x20   : > { %s3537_s7 = scalar_select %p2961_p11, 1, 0 }
  0x21   : > { %3536 = sst [smem:[#allocation20_spill]] %s3535_s6  ;;  %s2484_s8 = smul.u32 1536, %s2826_s22 }
  0x22   : > { %3538 = sst [smem:[#allocation21_spill]] %s3537_s7  ;;  %p2967_p13 = pnand %p2050_p8, %p196_p12 }
  0x23   : > { %s2840_s10 = smov [#allocation6]   ;;  %s3540_s1 = sld [smem:[#allocation26_spill]] }
  0x24   : > { %s3539_s9 = scalar_select %p2967_p13, 1, 0 }
  0x25   : > { %s211_s11 = sshll.u32 %s2840_s10, 4  ;;  %p2498_p0 = pneg %p2967_p13  ;;  %s2976_s11 = int_to_ptr.vmem [resolvable:$true] %s211_s11 }
  0x27   : > { %p2982_p1 = pnand %p2498_p0, %p2944_p5 }
  0x29   : > { %s2974_s14 = scalar_lea.hbm %s3540_s1, %s2484_s8  ;;  %p2622_p6 = pneg %p2982_p1 }
  0x2a   : > { %s2620_s27 = scalar_lea.hbm %s2974_s14, 1536  ;;  %s2625_s12 = scalar_lea.hbm %s3540_s1, 3072 }
  0x2b   : > { %p2621_p2 = scmp.ne.s32.totalorder %s2974_s14, %s2620_s27  ;;  %p2626_p12 = scmp.lt.u32.totalorder %s2974_s14, %s3540_s1 }
  0x2c   : > { %p2627_p0 = scmp.lt.u32.totalorder %s2625_s12, %s2620_s27  ;;  %p2629_p9 = scmp.lt.u32.totalorder %s2620_s27, %s2974_s14 }
  0x2d   : > { %p2623_p7 = pnand %p2622_p6, %p2621_p2 }
  0x2e   : > { %p2628_p10 = por %p2627_p0, %p2626_p12 }
  0x2f   : > { %p2624_p8 = pneg %p2623_p7 }
  0x30   : > { %p2630_p11 = por %p2629_p9, %p2628_p10 }
  0x32   : > { %p2631_p5 = pnand %p2630_p11, %p2624_p8 }
  0x34   : > { %2634 = shalt.err (!%p2631_p5)
}
  0x35   : > { %s2635_s15 = scalar_lea.vmem %s2976_s11, 1536  ;;  %p2643_p13 = scmp.lt.s32.totalorder %s2976_s11, %s2976_s11 }
  0x36   : > { %p2636_p2 = scmp.ne.s32.totalorder %s2976_s11, %s2635_s15  ;;  %p2644_p4 = scmp.lt.s32.totalorder %s2635_s15, %s2635_s15 }
  0x38   : > { %p2638_p7 = pnand %p2636_p2, %p2622_p6  ;;  %p2645_p0 = por %p2644_p4, %p2643_p13 }
  0x3a   : > { %p2639_p3 = pneg %p2638_p7 }
  0x3c   : > { %p2646_p12 = pnand %p2645_p0, %p2639_p3 }
  0x3e   : > { %2649 = shalt.err (!%p2646_p12)
}
  0x3f   : > { %s3508_s6 = smov 128   ;;  %s3509_s27 = smov 8  }
  0x40   : > { %2501 = dma.hbm_to_vmem [thread:$0]  (!%p2982_p1), %s2974_s14, 1536, %s2976_s11, [#allocation7], %s3508_s6, %s3508_s6, %s3509_s27  }
  0x41   : > { %s34_s15 = sadd.s32 1, %s2830_s23  ;;  %s37_s8 = sadd.s32 1, %s2834_s24 }
  0x42   : > { %p35_p3 = scmp.ge.s32.totalorder %s34_s15, 8  ;;  %s2046_s10 = sshll.u32 %s2834_s24, 1 }
  0x43   : > { %s42_s12 = ssub.s32 1, %s2046_s10  ;;  %s44_s13 = smul.u32 7, %s2834_s24 }
  0x44   : > { %s3584_s15 = smov (%p35_p3, %s34_s15), 0  ;;  %s3586_s8 = smov (!%p35_p3, %s37_s8), %s2834_s24 }
  0x45   : > { %3542 = sst [smem:[#allocation22_spill]] %s3584_s15  ;;  %s82_s1 = sadd.s32 1, %s2806_s17 }
  0x46   : > { %s43_s5 = smul.u32 %s2830_s23, %s42_s12  ;;  %p39_p4 = scmp.ge.s32.totalorder %s3586_s8, 2 }
  0x47   : > { %s56_s26 = sadd.s32 1, %s2818_s20  ;;  %p63_p5 = scmp.ne.s32.totalorder %s2818_s20, %s2814_s19 }
  0x48   : > { %p64_p9 = scmp.eq.s32.totalorder %s2838_s25, 0  ;;  %s3588_s8 = smov (%p39_p4, %s3586_s8), 0 }
  0x49   : > { %3543 = sst [smem:[#allocation23_spill]] %s3588_s8  ;;  %s45_s11 = sadd.s32 %s44_s13, %s43_s5 }
  0x4a   : > { %p3544_p10 = scmp.ne.s32.totalorder %s3531_s29, 0  ;;  %s2047_s10 = sshll.u32 %s3588_s8, 1 }
  0x4b   : > { %s49_s12 = smul.u32 7, %s3588_s8  ;;  %s47_s6 = ssub.s32 1, %s2047_s10 }
  0x4c   : > { %p3032_p11 = por %p3544_p10, %p63_p5  ;;  %s51_s27 = ssub.s32 %s2834_s24, %s3588_s8 }
  0x4d   : > { %s48_s23 = smul.u32 %s47_s6, %s3584_s15  ;;  %p3041_p13 = por %p64_p9, %p63_p5 }
  0x4e   : > { %s3545_s14 = scalar_select %p3032_p11, 1, 0 }
  0x4f   : > { %p80_p1 = scmp.eq.s32.totalorder %s51_s27, 0  ;;  %s232_s5 = sand.u32 1, %s2818_s20  }
  0x50   : > { %3546 = sst [smem:[#allocation24_spill]] %s3545_s14  ;;  %s50_s29 = sadd.s32 %s49_s12, %s48_s23 }
  0x51   : > { %p2513_p6 = scmp.lt.s32.totalorder %s2838_s25, 16  ;;  %s52_s13 = ssub.s32 %s45_s11, %s50_s29 }
  0x52   : > { %s2485_s7 = smul.u32 24, %s232_s5  ;;  %s53_s3 = sor.u32 %s52_s13, %s51_s27 }
  0x53   : > { %s2486_s4 = smul.u32 3, %s45_s11  ;;  %p54_p8 = scmp.eq.s32.totalorder %s53_s3, 0 }
  0x54   : > { %s3048_s14 = scalar_select %p80_p1, %s2806_s17, %s82_s1  }
  0x55   : > { %s3051_s21 = scalar_select %p54_p8, %s2818_s20, %s56_s26  }
  0x56   : > { %s2487_s10 = smul.u32 24, %s2834_s24  ;;  %s236_s6 = scalar_lea.vmem [#allocation3], %s2485_s7 }
  0x57   : > { %s250_s8 = sshll.u32 %s236_s6, 4  ;;  %p3056_p2 = pnand %p2513_p6, %p3041_p13  ;;  %s3060_s8 = int_to_ptr.vmem [resolvable:$true] %s250_s8 }
  0x58   : > { %s247_s23 = sadd.s32 %s2487_s10, %s2486_s4  ;;  %s3549_s0 = sld [smem:[#allocation25_spill]] }
  0x59   : > { %s2054_s27 = sshll.u32 %s247_s23, 7  ;;  %s3067_s18 = scalar_lea.sflag [#allocation4], %s232_s5 }
  0x5a   : > { %p2652_p0 = pneg %p3056_p2 }
  0x5e   : > { %s3065_s1 = scalar_lea.hbm %s3549_s0, %s2054_s27  ;;  %s2655_s12 = scalar_lea.hbm %s3549_s0, 6144 }
  0x5f   : > { %s2650_s7 = scalar_lea.hbm %s3065_s1, 384  ;;  %p2656_p4 = scmp.lt.u32.totalorder %s3065_s1, %s3549_s0 }
  0x60   : > { %p2651_p7 = scmp.ne.s32.totalorder %s3065_s1, %s2650_s7  ;;  %p2657_p5 = scmp.lt.u32.totalorder %s2655_s12, %s2650_s7 }
  0x61   : > { %p2659_p10 = scmp.lt.u32.totalorder %s2650_s7, %s3065_s1 }
  0x62   : > { %p2653_p12 = pnand %p2652_p0, %p2651_p7  ;;  %p2658_p9 = por %p2657_p5, %p2656_p4 }
  0x64   : > { %p2654_p3 = pneg %p2653_p12  ;;  %p2660_p13 = por %p2659_p10, %p2658_p9 }
  0x66   : > { %p2661_p1 = pnand %p2660_p13, %p2654_p3 }
  0x68   : > { %2664 = shalt.err (!%p2661_p1)
}
  0x69   : > { %s2665_s5 = scalar_lea.vmem %s3060_s8, 384  ;;  %s2843_s10 = smov [#allocation3]  }
  0x6a   : > { %p2666_p6 = scmp.ne.s32.totalorder %s3060_s8, %s2665_s5  ;;  %s2670_s6 = sshll.u32 %s2843_s10, 4  ;;  %s2671_s6 = int_to_ptr.vmem [resolvable:$false] %s2670_s6 }
  0x6b   : > { %s2672_s23 = scalar_lea.vmem %s2671_s6, 768  ;;  %p2673_p12 = scmp.lt.s32.totalorder %s3060_s8, %s2671_s6 }
  0x6c   : > { %p2668_p8 = pnand %p2666_p6, %p2652_p0  ;;  %p2674_p4 = scmp.lt.s32.totalorder %s2672_s23, %s2665_s5 }
  0x6e   : > { %p2669_p7 = pneg %p2668_p8  ;;  %p2675_p5 = por %p2674_p4, %p2673_p12 }
  0x70   : > { %p2676_p9 = pnand %p2675_p5, %p2669_p7 }
  0x72   : > { %2679 = shalt.err (!%p2676_p9)
}
  0x73   : > { %s3550_s27 = smov 8   ;;  %s3551_s11 = smov 128  }
  0x74   : > { %2505 = dma.hbm_to_vmem [thread:$0]  (!%p3056_p2), %s3065_s1, 384, %s3060_s8, %s3067_s18, %s3551_s11, %s3551_s11, %s3550_s27  }
  0x75   : > { %p3552_p0 = scmp.ne.s32.totalorder %s3539_s9, 0 }
  0x76   : > { %s3101_s3 = sand.u32 (!%p3552_p0), 1, %s2814_s19   ;;  %p3553_p3 = scmp.ne.s32.totalorder (!%p3552_p0), %s3530_s28, 0 }
  0x77   : > { %262 = sbr.rel (%p3552_p0) target bundleno = 539 (0x21b), region = 32  ;;  %s265_s4 = scalar_lea.sflag (!%p3552_p0), [#allocation4], %s3101_s3 }
  0x78   : > { %s2488_s7 = smul.u32 (!%p3552_p0), 24, %s3101_s3 }
  0x7a   : > { %s3105_s26 = scalar_lea.vmem (!%p3552_p0), [#allocation3], %s2488_s7 }
  0x7e   : > { %2781 = dma.done.wait (%p3553_p3), %s265_s4, 384  }
  0x7f   : > { %2783 = vsyncadd (%p3553_p3), %s265_s4, 4294966912  ;;  %p3554_p2 = scmp.ne.s32.totalorder %s3532_s30, 0 }
  0x81   : > { %2785 = dma.done.wait (%p3554_p2), [#allocation7], 1536  }
  0x82   : > { %2787 = vsyncadd (%p3554_p2), [#allocation7], 4294965760  ;;  %s2056_s9 = sshll.u32 %s3101_s3, 3  ;;  %s3520_s15 = sand.u32 1, %s2802_s16  }
  0x83   : > { %s3119_s8 = sshll.u32 %s3520_s15, 3  ;;  %p311_p10 = scmp.lt.s32.totalorder %s2826_s22, 1 }
  0x84   : > { %s3128_s30 = scalar_lea.vmem [#allocation8], %s2056_s9  ;;  %s3521_s13 = scalar_lea.vmem [#allocation9], %s3119_s8 }
  0x85   : > { %s312_s28 = scalar_select %p311_p10, %s2826_s22, 1 }
  0x86   : > { %s3555_s5 = sld [smem:[#allocation17_spill]] }
  0x87   : > { %s2489_s1 = smul.u32 3, %s312_s28 }
  0x89   : > { %s3126_s29 = scalar_lea.vmem %s3496_s2, %s2489_s1 }
  0x8c   : > { %p2058_p13 = scmp.ne.s32.totalorder %s3555_s5, 0 }
  0x8d   : > { %vm324_vm0 = vcmask (!%p2058_p13), 261120   ;;  %v2844_v0 = vmov (!%p2058_p13), 0.0  }
  0x8e   : > { %323 = sbr.rel (%p2058_p13) target bundleno = 149 (0x95), region = 44  ;;  %325 = vst.msk [vmem:[#allocation2] sm:$0xff] (!%p2058_p13), %vm324_vm0, %v2844_v0 }
  0x95 PF: > { %v327_v1 = vld [vmem:[#allocation6] sm:$0xff]  ;;  %v328_v2 = vld [vmem:[#allocation6 + $0x8] sm:$0xff]  ;;  %v2845_v4 = vmov 0.0|0.0   ;;  %v329_v9 = vld [vmem:[#allocation6 + $0x10] sm:$0xff]  ;;  %vm2846_vm1 = vmmov 0   ;;  %v2847_v16 = vmov 0.0  }
  0x96   : > { %v828_v3 = vld [vmem:[#allocation6 + $0x20] sm:$0xff]  ;;  %2365 = vmatprep.subr.bf16.mxu1 %v2845_v4  ;;  %2401 = vmatprep.subr.bf16.mxu0 %v2845_v4  ;;  %v343_v5 = vand.u32 4294901760, %v327_v1  ;;  %v346_v6 = vand.u32 4294901760, %v328_v2  ;;  %v829_v7 = vld [vmem:[#allocation6 + $0x28] sm:$0xff]  ;;  %v330_v10 = vld [vmem:[#allocation6 + $0x18] sm:$0xff]  ;;  %v349_v12 = vand.u32 4294901760, %v329_v9 }
  0x97   : > { %v841_v8 = vand.u32 4294901760, %v828_v3  ;;  %v844_v11 = vand.u32 4294901760, %v829_v7  ;;  %v352_v13 = vand.u32 4294901760, %v330_v10  ;;  %v830_v14 = vld [vmem:[#allocation6 + $0x30] sm:$0xff]  ;;  %v831_v15 = vld [vmem:[#allocation6 + $0x38] sm:$0xff]  ;;  %2175 = vmatprep.mubr.msk.f32.mxu1 %vm2846_vm1, %v2847_v16  ;;  %2241 = vmatprep.mubr.msk.f32.mxu0 %vm2846_vm1, %v2847_v16  ;;  %v3144_v20 = vld [vmem:[#allocation2] sm:$0xff] }
  0x98   : > { %v3138_v17 = vpack.c.bf16 %v346_v6, %v343_v5  ;;  %v3140_v18 = vsub.f32 %v327_v1, %v343_v5  ;;  %v3142_v19 = vsub.f32 %v328_v2, %v346_v6  ;;  %v3150_v23 = vsub.f32 %v329_v9, %v349_v12  ;;  %v1326_v52 = vld [vmem:[#allocation6 + $0x40] sm:$0xff]  ;;  %v1327_v53 = vld [vmem:[#allocation6 + $0x48] sm:$0xff]  ;;  %v1328_v60 = vld [vmem:[#allocation6 + $0x50] sm:$0xff]  ;;  %s3556_s10 = sld [smem:[#allocation17_spill]] }
  0x99   : > { %v3146_v21 = vpack.c.bf16 %v844_v11, %v841_v8  ;;  %v3148_v22 = vpack.c.bf16 %v352_v13, %v349_v12  ;;  %v3153_v24 = vsub.f32 %v330_v10, %v352_v13  ;;  %v847_v25 = vand.u32 4294901760, %v830_v14  ;;  %v1329_v61 = vld [vmem:[#allocation6 + $0x58] sm:$0xff] }
  0x9a   : > { %2367 = vmatpush3.bf16.msra.mxu1 %v3138_v17  ;;  %v850_v26 = vand.u32 4294901760, %v831_v15  ;;  %vm338_vm2 = vcmask 261120   ;;  %v424_v28 = vand.u32 4294901760, %v3140_v18  ;;  %v431_v29 = vand.u32 4294901760, %v3142_v19 }
  0x9b   : > { %2403 = vmatpush3.bf16.msra.mxu0 %v3146_v21  ;;  %2368 = vmatprep.subr.bf16.mxu1 %v2845_v4  ;;  %v340_v27 = vsel %vm338_vm2, %v3144_v20, 0  ;;  %v438_v34 = vand.u32 4294901760, %v3150_v23  ;;  %v445_v35 = vand.u32 4294901760, %v3153_v24  ;;  %v3174_v36 = vsub.f32 %v828_v3, %v841_v8 }
  0x9c   : > { %2404 = vmatprep.subr.bf16.mxu0 %v2845_v4  ;;  %v3162_v30 = vpack.c.bf16 %v850_v26, %v847_v25  ;;  %v3164_v31 = vand.u32 4294901760, %v340_v27  ;;  %v425_v32 = vsub.f32 %v3140_v18, %v424_v28  ;;  %v432_v33 = vsub.f32 %v3142_v19, %v431_v29 }
  0x9d   : > { %v3176_v37 = vsub.f32 %v829_v7, %v844_v11  ;;  %v439_v41 = vsub.f32 %v3150_v23, %v438_v34  ;;  %v446_v42 = vsub.f32 %v3153_v24, %v445_v35  ;;  %v3194_v44 = vsub.f32 %v830_v14, %v847_v25 }
  0x9e   : > { %2370 = vmatpush3.bf16.msra.mxu1 %v3148_v22  ;;  %v3180_v38 = vsub.f32 %v340_v27, %v3164_v31  ;;  %v426_v39 = vand.u32 4294901760, %v425_v32  ;;  %v433_v40 = vand.u32 4294901760, %v432_v33  ;;  %v3200_v47 = vsub.f32 %v831_v15, %v850_v26  ;;  %p2068_p1 = scmp.ne.s32.totalorder %s3556_s10, 7 }
  0x9f   : > { %2406 = vmatpush3.bf16.msra.mxu0 %v3162_v30  ;;  %2371 = vmatprep.subr.bf16.mxu1 %v2845_v4  ;;  %v2414_v46 = vpack.c.bf16 %v3176_v37, %v3174_v36  ;;  %v440_v49 = vand.u32 4294901760, %v439_v41  ;;  %v447_v50 = vand.u32 4294901760, %v446_v42  ;;  %v922_v54 = vand.u32 4294901760, %v3174_v36 }
  0xa0   : > { %v3191_v43 = vand.u32 4294901760, %v3180_v38  ;;  %2413 = vmatprep.subr.bf16.mxu0 %v2845_v4  ;;  %v2372_v48 = vpack.c.bf16 %v433_v40, %v426_v39  ;;  %v929_v55 = vand.u32 4294901760, %v3176_v37  ;;  %v2417_v57 = vpack.c.bf16 %v3200_v47, %v3194_v44 }
  0xa1   : > { %v2375_v56 = vpack.c.bf16 %v447_v50, %v440_v49  ;;  %v1339_v58 = vand.u32 4294901760, %v1326_v52  ;;  %v1342_v59 = vand.u32 4294901760, %v1327_v53  ;;  %v2378_v62 = vpack.c.bf16 %v3142_v19, %v3140_v18 }
  0xa2   : > { %v414_v45 = vsub.f32 %v3180_v38, %v3191_v43  ;;  %v2426_v63 = vpack.c.bf16 %v929_v55, %v922_v54  ;;  %v936_v0 = vand.u32 4294901760, %v3194_v44  ;;  %v943_v1 = vand.u32 4294901760, %v3200_v47 }
  0xa3   : > { %v3224_v2 = vsub.f32 %v1326_v52, %v1339_v58  ;;  %v3226_v3 = vsub.f32 %v1327_v53, %v1342_v59  ;;  %v1345_v5 = vand.u32 4294901760, %v1328_v60  ;;  %v1348_v6 = vand.u32 4294901760, %v1329_v61 }
  0xa4   : > { %v3202_v51 = vand.u32 4294901760, %v414_v45  ;;  %v2381_v7 = vpack.c.bf16 %v3153_v24, %v3150_v23  ;;  %v2429_v8 = vpack.c.bf16 %v943_v1, %v936_v0  ;;  %v3250_v13 = vpack.c.bf16 %v1342_v59, %v1339_v58 }
  0xa5   : > { %v3238_v9 = vsub.f32 %v1328_v60, %v1345_v5  ;;  %v3240_v10 = vsub.f32 %v1329_v61, %v1348_v6  ;;  %v1420_v11 = vand.u32 4294901760, %v3224_v2  ;;  %v1427_v12 = vand.u32 4294901760, %v3226_v3 }
  0xa6   : > { %2176 = vmatmul.mubr.f32.vlgmr.msra.gmra.mrb[0].mxu1 %v3202_v51  ;;  %2242 = vmatmul.mubr.f32.vlgmr.msra.gmra.mrb[0].mxu0 %v3202_v51  ;;  %v3264_v27 = vpack.c.bf16 %v1348_v6, %v1345_v5  ;;  %v2390_v41 = vpack.c.bf16 %v431_v29, %v424_v28  ;;  %v2393_v18 = vpack.c.bf16 %v445_v35, %v438_v34 }
  0xa7   : > { %2373 = vmatpush3.bf16.msra.mxu1 %v2372_v48  ;;  %2415 = vmatpush3.bf16.msra.mxu0 %v2414_v46  ;;  %v1421_v14 = vsub.f32 %v3224_v2, %v1420_v11  ;;  %v1428_v15 = vsub.f32 %v3226_v3, %v1427_v12  ;;  %v1434_v25 = vand.u32 4294901760, %v3238_v9  ;;  %v1441_v26 = vand.u32 4294901760, %v3240_v10 }
  0xa8   : > { %2374 = vmatprep.subr.bf16.mxu1 %v2845_v4  ;;  %2416 = vmatprep.subr.bf16.mxu0 %v2845_v4  ;;  %v2450_v28 = vpack.c.bf16 %v3226_v3, %v3224_v2  ;;  %v923_v23 = vsub.f32 %v3174_v36, %v922_v54  ;;  %v930_v24 = vsub.f32 %v3176_v37, %v929_v55  ;;  %v1823_v2 = vld [vmem:[%s3105_s26] sm:$0xff] }
  0xa9   : > { %2186 = vmatprep.mubr.msk.f32.mxu1 %vm2846_vm1, %v2847_v16  ;;  %2263 = vmatprep.mubr.msk.f32.mxu0 %vm2846_vm1, %v2847_v16  ;;  %v1422_v32 = vand.u32 4294901760, %v1421_v14  ;;  %v1429_v33 = vand.u32 4294901760, %v1428_v15  ;;  %v1435_v39 = vsub.f32 %v3238_v9, %v1434_v25  ;;  %v1442_v40 = vsub.f32 %v3240_v10, %v1441_v26 }
  0xaa   : > { %v2453_v29 = vpack.c.bf16 %v3240_v10, %v3238_v9  ;;  %v924_v34 = vand.u32 4294901760, %v923_v23  ;;  %v931_v35 = vand.u32 4294901760, %v930_v24  ;;  %v937_v36 = vsub.f32 %v3194_v44, %v936_v0 }
  0xab   : > { %2376 = vmatpush3.bf16.msra.mxu1 %v2375_v56  ;;  %2418 = vmatpush3.bf16.msra.mxu0 %v2417_v57  ;;  %v2444_v42 = vpack.c.bf16 %v1429_v33, %v1422_v32  ;;  %v1436_v45 = vand.u32 4294901760, %v1435_v39  ;;  %v1443_v46 = vand.u32 4294901760, %v1442_v40  ;;  %v944_v37 = vsub.f32 %v3200_v47, %v943_v1  ;;  %v2065_v39 = vld [vmem:[%s3105_s26 + $0x8] sm:$0xff] }
  0xac   : > { %2377 = vmatprep.subr.bf16.mxu1 %v2845_v4  ;;  %2425 = vmatprep.subr.bf16.mxu0 %v2845_v4  ;;  %v938_v48 = vand.u32 4294901760, %v937_v36 }
  0xad   : > { %v2447_v19 = vpack.c.bf16 %v1443_v46, %v1436_v45  ;;  %v945_v44 = vand.u32 4294901760, %v944_v37  ;;  %v2063_v46 = vld [vmem:[%s3126_s29 + $0x2] ss:$0 sm:$0xff] }
  0xae   : > { %2187 = vmatmul.mubr.f32.vlgmr.msra.gmra.mrb[2].mxu1 %v3164_v31  ;;  %2264 = vmatmul.mubr.f32.vlgmr.msra.gmra.mrb[2].mxu0 %v3180_v38 }
  0xaf   : > { %2379 = vmatpush3.bf16.msra.mxu1 %v2378_v62  ;;  %2427 = vmatpush3.bf16.msra.mxu0 %v2426_v63  ;;  %v2411_v47 = vpack.c.bf16 %v945_v44, %v938_v48 }
  0xb0   : > { %2380 = vmatprep.subr.bf16.mxu1 %v2845_v4  ;;  %2428 = vmatprep.subr.bf16.mxu0 %v2845_v4 }
  0xb1   : > { %2197 = vmatprep.mubr.msk.f32.mxu1 %vm2846_vm1, %v2847_v16  ;;  %2285 = vmatprep.mubr.msk.f32.mxu0 %vm2846_vm1, %v2847_v16 }
  0xb3   : > { %2382 = vmatpush3.bf16.msra.mxu1 %v2381_v7  ;;  %2430 = vmatpush3.bf16.msra.mxu0 %v2429_v8  ;;  %v2061_v7 = vld [vmem:[%s3126_s29 + $0x1] ss:$0 sm:$0xff] }
  0xb4   : > { %2383 = vmatprep.subr.bf16.mxu1 %v2845_v4  ;;  %2437 = vmatprep.subr.bf16.mxu0 %v2845_v4 }
  0xb6   : > { %2198 = vmatmul.mubr.f32.vlgmr.msra.gmra.mrb[4].mxu1 %v3180_v38  ;;  %2286 = vmatmul.mubr.f32.vlgmr.msra.gmra.mrb[4].mxu0 %v3164_v31 }
  0xb7   : > { %2385 = vmatpush3.bf16.msra.mxu1 %v3138_v17  ;;  %2439 = vmatpush3.bf16.msra.mxu0 %v3250_v13 }
  0xb8   : > { %2386 = vmatprep.subr.bf16.mxu1 %v2845_v4  ;;  %2440 = vmatprep.subr.bf16.mxu0 %v2845_v4 }
  0xb9   : > { %2208 = vmatprep.mubr.msk.f32.mxu1 %vm2846_vm1, %v2847_v16  ;;  %2307 = vmatprep.mubr.msk.f32.mxu0 %vm2846_vm1, %v2847_v16 }
  0xbb   : > { %2388 = vmatpush3.bf16.msra.mxu1 %v3148_v22  ;;  %2442 = vmatpush3.bf16.msra.mxu0 %v3264_v27 }
  0xbc   : > { %2389 = vmatprep.subr.bf16.mxu1 %v2845_v4  ;;  %2443 = vmatprep.subr.bf16.mxu0 %v2845_v4 }
  0xbe   : > { %2209 = vmatmul.mubr.f32.vlgmr.msra.gmra.mrb[6].mxu1 %v3191_v43  ;;  %2308 = vmatmul.mubr.f32.vlgmr.msra.gmra.mrb[6].mxu0 %v3202_v51  ;;  %v2059_v51 = vld [vmem:[%s3126_s29] ss:$0 sm:$0xff] }
  0xbf   : > { %2391 = vmatpush3.bf16.msra.mxu1 %v2390_v41  ;;  %2445 = vmatpush3.bf16.msra.mxu0 %v2444_v42 }
  0xc0   : > { %2392 = vmatprep.subr.bf16.mxu1 %v2845_v4  ;;  %2446 = vmatprep.subr.bf16.mxu0 %v2845_v4 }
  0xc1   : > { %2219 = vmatprep.mubr.msk.f32.mxu1 %vm2846_vm1, %v2847_v16  ;;  %2318 = vmatprep.mubr.msk.f32.mxu0 %vm2846_vm1, %v2847_v16 }
  0xc3   : > { %2394 = vmatpush3.bf16.msra.mxu1 %v2393_v18  ;;  %2448 = vmatpush3.bf16.msra.mxu0 %v2447_v19 }
  0xc4   : > { %2395 = vmatprep.subr.bf16.mxu1 %v2845_v4  ;;  %2449 = vmatprep.subr.bf16.mxu0 %v2845_v4 }
  0xc6   : > { %2220 = vmatmul.mubr.f32.vlgmr.msra.gmra.mrb[8].mxu1 %v3164_v31  ;;  %2319 = vmatmul.mubr.f32.vlgmr.msra.gmra.mrb[6].mxu0 %v3164_v31 }
  0xc7   : > { %2397 = vmatpush3.bf16.msra.mxu1 %v3138_v17  ;;  %2451 = vmatpush3.bf16.msra.mxu0 %v2450_v28  ;;  %v2408_v17 = vpack.c.bf16 %v931_v35, %v924_v34 }
  0xc8   : > { %2398 = vmatprep.subr.bf16.mxu1 %v2845_v4  ;;  %2452 = vmatprep.subr.bf16.mxu0 %v2845_v4 }
  0xc9   : > { %2230 = vmatprep.mubr.msk.f32.mxu1 %vm2846_vm1, %v2847_v16  ;;  %2329 = vmatprep.mubr.msk.f32.mxu0 %vm2846_vm1, %v2847_v16 }
  0xcb   : > { %2400 = vmatpush3.bf16.msra.mxu1 %v3148_v22  ;;  %2454 = vmatpush3.bf16.msra.mxu0 %v2453_v29  ;;  %v2462_v22 = vpack.c.bf16 %v1427_v12, %v1420_v11  ;;  %v2067_v29 = vld [vmem:[%s3105_s26 + $0x10] sm:$0xff] }
  0xcc   : > { %2407 = vmatprep.subr.bf16.mxu1 %v2845_v4  ;;  %2455 = vmatprep.subr.bf16.mxu0 %v2845_v4 }
  0xce   : > { %2231 = vmatmul.mubr.f32.vlgmr.msra.gmra.mrb[10].mxu1 %v3164_v31  ;;  %2330 = vmatmul.mubr.f32.vlgmr.msra.gmra.mrb[6].mxu0 %v3180_v38  ;;  %v2465_v38 = vpack.c.bf16 %v1441_v26, %v1434_v25 }
  0xcf   : > { %2409 = vmatpush3.bf16.msra.mxu1 %v2408_v17  ;;  %2457 = vmatpush3.bf16.msra.mxu0 %v3250_v13 }
  0xd0   : > { %2410 = vmatprep.subr.bf16.mxu1 %v2845_v4  ;;  %2458 = vmatprep.subr.bf16.mxu0 %v2845_v4 }
  0xd1   : > { %2252 = vmatprep.mubr.msk.f32.mxu1 %vm2846_vm1, %v2847_v16  ;;  %2340 = vmatprep.mubr.msk.f32.mxu0 %vm2846_vm1, %v2847_v16 }
  0xd3   : > { %2412 = vmatpush3.bf16.msra.mxu1 %v2411_v47  ;;  %2460 = vmatpush3.bf16.msra.mxu0 %v3264_v27 }
  0xd4   : > { %2419 = vmatprep.subr.bf16.mxu1 %v2845_v4  ;;  %2461 = vmatprep.subr.bf16.mxu0 %v2845_v4 }
  0xd6   : > { %2253 = vmatmul.mubr.f32.vlgmr.msra.gmra.mrb[12].mxu1 %v3164_v31  ;;  %2341 = vmatmul.mubr.f32.vlgmr.msra.gmra.mrb[6].mxu0 %v3191_v43 }
  0xd7   : > { %2421 = vmatpush3.bf16.msra.mxu1 %v3146_v21  ;;  %2463 = vmatpush3.bf16.msra.mxu0 %v2462_v22 }
  0xd8   : > { %2422 = vmatprep.subr.bf16.mxu1 %v2845_v4  ;;  %2464 = vmatprep.subr.bf16.mxu0 %v2845_v4 }
  0xd9   : > { %2274 = vmatprep.mubr.msk.f32.mxu1 %vm2846_vm1, %v2847_v16  ;;  %2351 = vmatprep.mubr.msk.f32.mxu0 %vm2846_vm1, %v2847_v16 }
  0xdb   : > { %2424 = vmatpush3.bf16.msra.mxu1 %v3162_v30  ;;  %2466 = vmatpush3.bf16.msra.mxu0 %v2465_v38 }
  0xdc   : > { %2431 = vmatprep.subr.bf16.mxu1 %v2845_v4  ;;  %2467 = vmatprep.subr.bf16.mxu0 %v2845_v4 }
  0xde   : > { %2275 = vmatmul.mubr.f32.vlgmr.msra.gmra.mrb[14].mxu1 %v3191_v43  ;;  %2352 = vmatmul.mubr.f32.vlgmr.msra.gmra.mrb[6].mxu0 %v3164_v31 }
  0xdf   : > { %2433 = vmatpush3.bf16.msra.mxu1 %v3146_v21  ;;  %2469 = vmatpush3.bf16.msra.mxu0 %v3250_v13 }
  0xe0   : > { %2434 = vmatprep.subr.bf16.mxu1 %v2845_v4  ;;  %2470 = vmatprep.subr.bf16.mxu0 %v2845_v4 }
  0xe1   : > { %2296 = vmatprep.mubr.msk.f32.mxu1 %vm2846_vm1, %v2847_v16  ;;  %2362 = vmatprep.mubr.msk.f32.mxu0 %vm2846_vm1, %v2847_v16 }
  0xe3   : > { %2436 = vmatpush3.bf16.msra.mxu1 %v3162_v30  ;;  %2472 = vmatpush3.bf16.msra.mxu0 %v3264_v27 }
  0xe6   : > { %2297 = vmatmul.mubr.f32.vlgmr.msra.gmra.mrb[16].mxu1 %v3164_v31  ;;  %2363 = vmatmul.mubr.f32.vlgmr.msra.gmra.mrb[6].mxu0 %v3164_v31 }
 0x179   : > { %v417_v21 = vpop.f32.mrb[0].mxu1  ;;  %v915_v43 = vpop.f32.mrb[0].mxu0 }
 0x17a   : > { %v2177_v49 = vpop.f32.mrb[1].mxu1  ;;  %v2243_v50 = vpop.f32.mrb[1].mxu0  ;;  %v418_v4 = vadd.f32 %v2059_v51, %v417_v21  ;;  %v916_v9 = vadd.f32 %v2061_v7, %v915_v43 }
 0x181   : > { %v508_v52 = vpop.f32.mrb[2].mxu1  ;;  %v1086_v53 = vpop.f32.mrb[2].mxu0 }
 0x182   : > { %v509_v54 = vadd.f32 %v508_v52, %v418_v4  ;;  %v2188_v55 = vpop.f32.mrb[3].mxu1  ;;  %v2265_v16 = vpop.f32.mrb[3].mxu0 }
 0x189   : > { %v588_v56 = vpop.f32.mrb[4].mxu1  ;;  %v1246_v30 = vpop.f32.mrb[4].mxu0 }
 0x18a   : > { %v589_v57 = vadd.f32 %v588_v56, %v509_v54  ;;  %v2199_v58 = vpop.f32.mrb[5].mxu1  ;;  %v2287_v59 = vpop.f32.mrb[5].mxu0 }
 0x191   : > { %v665_v60 = vpop.f32.mrb[6].mxu1 }
 0x192   : > { %v666_v31 = vadd.f32 %v665_v60, %v589_v57  ;;  %v2210_v61 = vpop.f32.mrb[7].mxu1 }
 0x199   : > { %v748_v62 = vpop.f32.mrb[8].mxu1 }
 0x19a   : > { %v749_v63 = vadd.f32 %v748_v62, %v666_v31  ;;  %v2221_v0 = vpop.f32.mrb[9].mxu1 }
 0x1a1   : > { %v823_v1 = vpop.f32.mrb[10].mxu1 }
 0x1a2   : > { %v824_v3 = vadd.f32 %v823_v1, %v749_v63  ;;  %v2232_v5 = vpop.f32.mrb[11].mxu1 }
 0x1a4   : > { %v1824_v6 = vadd.f32 %v1823_v2, %v824_v3 }
 0x1a6   : > { %v2064_v8 = vmul.f32 -1.442695, %v1824_v6 }
 0x1a8   : > { %2610 = vpow2.f32 %v2064_v8 }
 0x1a9   : > { %v1006_v10 = vpop.f32.mrb[12].mxu1 }
 0x1aa   : > { %v1007_v11 = vadd.f32 %v1006_v10, %v916_v9  ;;  %v2254_v12 = vpop.f32.mrb[13].mxu1 }
 0x1ac   : > { %v1087_v13 = vadd.f32 %v1086_v53, %v1007_v11 }
 0x1b1   : > { %v1163_v14 = vpop.f32.mrb[14].mxu1 }
 0x1b2   : > { %v2611_v15 = vpop.eup %2610  ;;  %v1164_v25 = vadd.f32 %v1163_v14, %v1087_v13  ;;  %v2276_v26 = vpop.f32.mrb[15].mxu1 }
 0x1b3   : > { %v1828_v27 = vadd.f32 1.0, %v2611_v15 }
 0x1b4   : > { %v1247_v32 = vadd.f32 %v1246_v30, %v1164_v25 }
 0x1b5   : > { %2612 = vrcp.f32 %v1828_v27 }
 0x1b9   : > { %v1321_v33 = vpop.f32.mrb[16].mxu1  ;;  %v1819_v40 = vpop.f32.mrb[6].mxu0 }
 0x1ba   : > { %v1322_v41 = vadd.f32 %v1321_v33, %v1247_v32  ;;  %v2298_v42 = vpop.f32.mrb[17].mxu1  ;;  %v2364_v45 = vpop.f32.mrb[7].mxu0  ;;  %v2473_v28 = vadd.f32 %v2063_v46, %v1819_v40 }
 0x1bc   : > { %v1833_v18 = vadd.f32 %v2065_v39, %v1322_v41 }
 0x1be   : > { %v2066_v19 = vmul.f32 -1.442695, %v1833_v18 }
 0x1bf   : > { %v2613_v23 = vpop.eup %2612 }
 0x1c0   : > { %2614 = vpow2.f32 %v2066_v19  ;;  %v1842_v24 = vmul.f32 %v2613_v23, %v2473_v28 }
 0x1c2   : > { %v1843_v36 = vadd.f32 %v2067_v29, %v1842_v24 }
 0x1ca   : > { %v2615_v34 = vpop.eup %2614 }
 0x1cb   : > { %v1837_v35 = vadd.f32 1.0, %v2615_v34 }
 0x1cd   : > { %2616 = vrcp.f32 %v1837_v35 }
 0x1ce   : > { %2618 = vtanh.f32 %v1843_v36 }
 0x1d7   : > { %v2617_v37 = vpop.eup %2616 }
 0x1d8   : > { %v1845_v17 = vsub.f32 1.0, %v2617_v37  ;;  %v2619_v48 = vpop.eup %2618  ;;  %v1847_v44 = vmul.f32 %v2617_v37, %v3144_v20  ;;  %1854 = sbr.rel (%p2068_p1) target bundleno = 480 (0x1e0), region = 48 }
 0x1da   : > { %v1846_v47 = vmul.f32 %v2619_v48, %v1845_v17 }
 0x1dc   : > { %v1848_v22 = vadd.f32 %v1847_v44, %v1846_v47 }
 0x1de   : > { %1849 = vst.msk [vmem:[#allocation2] sm:$0xff] %vm338_vm2, %v1848_v22  ;;  %1850 = vst.msk [vmem:[%s3128_s30] sm:$0xff] %vm338_vm2, %v1848_v22 }
 0x1df   : > { %1855 = vst.msk [vmem:[%s3521_s13] sm:$0xff] %vm338_vm2, %v1848_v22 }
 0x1e0 PF: > { %s3557_s6 = sld [smem:[#allocation17_spill]]  ;;  %s2071_s23 = sshll.u32 %s2826_s22, 1 }
 0x1e1   : > { %s1870_s27 = ssub.s32 1, %s2071_s23  ;;  %s1872_s7 = smul.u32 7, %s2826_s22 }
 0x1e2   : > { %s2072_s26 = sshll.u32 %s2826_s22, 3  ;;  %s1882_s9 = sshll.u32 %s3128_s30, 4  ;;  %s3395_s9 = int_to_ptr.vmem [resolvable:$true] %s1882_s9 }
 0x1e3   : > { %s2074_s18 = sshll.u32 %s2826_s22, 7  ;;  %s3559_s10 = sld [smem:[#allocation28_spill]] }
 0x1e4   : > { %s3560_s0 = sld [smem:[#allocation27_spill]]  ;;  %s3561_s30 = scalar_lea.vmem [#allocation9], %s3119_s8 }
 0x1e5   : > { %s2848_s22 = smov [#allocation8]  }
 0x1e6   : > { %s1871_s4 = smul.u32 %s3557_s6, %s1870_s27  ;;  %s3410_s27 = sshll.u32 %s3561_s30, 4  ;;  %s1896_s27 = int_to_ptr.vmem [resolvable:$true] %s3410_s27 }
 0x1e8   : > { %s1873_s28 = sadd.s32 %s1872_s7, %s1871_s4  ;;  %s1857_s7 = scalar_lea.sflag [#allocation5], %s3101_s3 }
 0x1e9   : > { %s1878_s1 = sadd.s32 %s2072_s26, %s1873_s28  ;;  %s3401_s15 = scalar_lea.hbm %s3559_s10, %s2074_s18 }
 0x1ea   : > { %s2073_s12 = sshll.u32 %s1878_s1, 7  ;;  %s2680_s4 = scalar_lea.vmem %s3395_s9, 128 }
 0x1eb   : > { %s3406_s6 = scalar_lea.hbm %s3560_s0, %s2073_s12  ;;  %p2681_p6 = scmp.ne.s32.totalorder %s3395_s9, %s2680_s4 }
 0x1ec   : > { %s2684_s26 = sshll.u32 %s2848_s22, 4  ;;  %s2685_s26 = int_to_ptr.vmem [resolvable:$false] %s2684_s26 }
 0x1ed   : > { %p2682_p8 = pnand %p2681_p6, %p3032_p11  ;;  %s2686_s28 = scalar_lea.vmem %s2685_s26, 256 }
 0x1ee   : > { %p2687_p12 = scmp.lt.s32.totalorder %s3395_s9, %s2685_s26  ;;  %p2688_p4 = scmp.lt.s32.totalorder %s2686_s28, %s2680_s4 }
 0x1ef   : > { %p2683_p7 = pneg %p2682_p8 }
 0x1f0   : > { %p2689_p5 = por %p2688_p4, %p2687_p12 }
 0x1f2   : > { %p2690_p9 = pnand %p2689_p5, %p2683_p7 }
 0x1f4   : > { %2693 = shalt.err (!%p2690_p9)
}
 0x1f5   : > { %s2694_s3 = scalar_lea.hbm %s3406_s6, 128  ;;  %s2698_s1 = scalar_lea.hbm %s3560_s0, 2048 }
 0x1f6   : > { %p2695_p0 = scmp.ne.s32.totalorder %s3406_s6, %s2694_s3  ;;  %p2699_p10 = scmp.lt.u32.totalorder %s3406_s6, %s3560_s0 }
 0x1f7   : > { %p2700_p13 = scmp.lt.u32.totalorder %s2698_s1, %s2694_s3  ;;  %p2702_p6 = scmp.lt.u32.totalorder %s2694_s3, %s3406_s6 }
 0x1f8   : > { %p2696_p3 = pnand %p2695_p0, %p3032_p11 }
 0x1f9   : > { %p2701_p1 = por %p2700_p13, %p2699_p10 }
 0x1fa   : > { %p2697_p2 = pneg %p2696_p3 }
 0x1fb   : > { %p2703_p8 = por %p2702_p6, %p2701_p1 }
 0x1fd   : > { %p2704_p7 = pnand %p2703_p8, %p2697_p2 }
 0x1ff   : > { %2707 = shalt.err (!%p2704_p7)
}
 0x200   : > { %s3562_s29 = sld [smem:[#allocation21_spill]]  ;;  %s3563_s5 = sand.u32 1, %s2802_s16  }
 0x201   : > { %2494 = dma.vmem_to_hbm [thread:$0]  (%p3032_p11), %s3395_s9, 128, %s3406_s6, %s1857_s7  }
 0x202   : > { %s1862_s23 = scalar_lea.sflag [#allocation10], %s3563_s5  ;;  %s2708_s30 = scalar_lea.vmem %s1896_s27, 128 }
 0x203   : > { %p2709_p12 = scmp.ne.s32.totalorder %s1896_s27, %s2708_s30  ;;  %s2849_s4 = smov [#allocation9]  }
 0x204   : > { %s2712_s22 = sshll.u32 %s2849_s4, 4  ;;  %s2713_s22 = int_to_ptr.vmem [resolvable:$false] %s2712_s22 }
 0x205   : > { %s2714_s26 = scalar_lea.vmem %s2713_s22, 256  ;;  %p2715_p0 = scmp.lt.s32.totalorder %s1896_s27, %s2713_s22 }
 0x206   : > { %p3564_p4 = scmp.ne.s32.totalorder %s3562_s29, 0  ;;  %p2716_p3 = scmp.lt.s32.totalorder %s2714_s26, %s2708_s30 }
 0x208   : > { %p2710_p5 = pnand %p2709_p12, %p3564_p4  ;;  %p2717_p2 = por %p2716_p3, %p2715_p0 }
 0x20a   : > { %p2711_p9 = pneg %p2710_p5 }
 0x20c   : > { %p2718_p10 = pnand %p2717_p2, %p2711_p9 }
 0x20e   : > { %2721 = shalt.err (!%p2718_p10)
}
 0x20f   : > { %s2722_s11 = scalar_lea.hbm %s3401_s15, 128  ;;  %s2726_s7 = scalar_lea.hbm %s3559_s10, 256 }
 0x210   : > { %p2723_p11 = scmp.ne.s32.totalorder %s3401_s15, %s2722_s11  ;;  %p2727_p6 = scmp.lt.u32.totalorder %s3401_s15, %s3559_s10 }
 0x211   : > { %p2728_p8 = scmp.lt.u32.totalorder %s2726_s7, %s2722_s11  ;;  %p2730_p12 = scmp.lt.u32.totalorder %s2722_s11, %s3401_s15 }
 0x212   : > { %p2724_p13 = pnand %p2723_p11, %p3564_p4 }
 0x213   : > { %p2729_p7 = por %p2728_p8, %p2727_p6 }
 0x214   : > { %p2725_p1 = pneg %p2724_p13 }
 0x215   : > { %p2731_p5 = por %p2730_p12, %p2729_p7 }
 0x217   : > { %p2732_p9 = pnand %p2731_p5, %p2725_p1 }
 0x219   : > { %2735 = shalt.err (!%p2732_p9)
}
 0x21a   : > { %2495 = dma.vmem_to_hbm [thread:$0]  (%p3564_p4), %s1896_s27, 128, %s3401_s15, %s1862_s23  }
 0x21b PF: > { %s3565_s8 = sld [smem:[#allocation16_spill]]  ;;  %s3566_s13 = sld [smem:[#allocation19_spill]] }
 0x21c   : > { %p2514_p0 = scmp.ge.s32.totalorder %s2838_s25, 2 }
 0x221   : > { %s1907_s1 = sand.u32 1, %s3565_s8   ;;  %p3567_p3 = scmp.ne.s32.totalorder %s3566_s13, 0 }
 0x222   : > { %s1908_s18 = scalar_lea.sflag [#allocation5], %s1907_s1 }
 0x223   : > { %p2507_p2 = pnand %p2514_p0, %p3567_p3 }
 0x225   : > { %2789 = dma.done.wait (!%p2507_p2), %s1908_s18, 128  }
 0x226   : > { %2791 = vsyncadd (!%p2507_p2), %s1908_s18, 4294967168  ;;  %s3568_s12 = sld [smem:[#allocation15_spill]]  ;;  %s3569_s5 = sld [smem:[#allocation20_spill]] }
 0x22c   : > { %s1916_s30 = sand.u32 1, %s3568_s12   ;;  %p3570_p10 = scmp.ne.s32.totalorder %s3569_s5, 0 }
 0x22d   : > { %s1917_s4 = scalar_lea.sflag [#allocation10], %s1916_s30 }
 0x22e   : > { %p2510_p11 = pnand %p2514_p0, %p3570_p10 }
 0x230   : > { %2793 = dma.done.wait (!%p2510_p11), %s1917_s4, 128  }
 0x231   : > { %2795 = vsyncadd (!%p2510_p11), %s1917_s4, 4294967168  ;;  %s25_s25 = sadd.s32 1, %s2838_s25   ;;  %s3571_s27 = sld [smem:[#allocation18_spill]] }
 0x232   : > { %p22_p4 = scmp.ge.s32.totalorder %s25_s25, 18   ;;  %s3572_s23 = sld [smem:[#allocation22_spill]] }
 0x233   : > { %s3573_s29 = sld [smem:[#allocation23_spill]]  ;;  %s3574_s15 = smov %s2802_s16 }
 0x234   : > { %s3575_s16 = smov %s2806_s17  ;;  %s3576_s17 = smov %s3048_s14 }
 0x235   : > { %s3577_s18 = smov %s2814_s19  ;;  %s3578_s19 = smov %s2818_s20 }
 0x236   : > { %s3579_s20 = smov %s3051_s21  ;;  %s3581_s22 = smov %s2834_s24 }
 0x237   : > { %s3580_s21 = smov %s3571_s27  ;;  %24 = sbr.rel (!%p22_p4) target bundleno = 17 (0x11), region = 116 }
 0x239   : > { %s3582_s24 = smov %s3573_s29 }
 0x23e   :  { %1922 = vsyncpa [#allocation4], 1 }
 0x23f   :  { %1924 = vsyncpa [#allocation4 + $0x1], 1 }
 0x240   :  { %1925 = vsyncpa [#allocation7], 1 }
 0x241   :  { %1926 = vsyncpa [#allocation5], 1 }
 0x242   :  { %1928 = vsyncpa [#allocation5 + $0x1], 1 }
 0x243   :  { %1929 = vsyncpa [#allocation10], 1 }
 0x244   :  { %1931 = vsyncpa [#allocation10 + $0x1], 1 }

// kernel: tpu_custom_call.1
= control target key start
LH: loop header
LB: loop body
LE: loop exit
PB: predicated region body
PF: predicated region fallthrough
CT: control target
= control target key end

     0   :  { %s3588_s0 = inlined_call_operand.hbm [shape: f32[2,8,3,8,32], index: 0, kind: input, shape index: {}]   ;;  %s3589_s1 = inlined_call_operand.hbm [shape: f32[2,3,32,32], index: 1, kind: input, shape index: {}]   ;;  %s3590_s2 = inlined_call_operand.vmem [shape: f32[2,3,1,32], index: 2, kind: input, shape index: {}]   ;;  %s3591_s3 = inlined_call_operand.hbm [shape: f32[2,8,8,32], index: 3, kind: output, shape index: {0}]   ;;  %s3592_s4 = inlined_call_operand.hbm [shape: f32[2,8,32], index: 4, kind: output, shape index: {1}]  }
   0x1   :  { %3614 = sst [smem:[#allocation25_spill]] %s3588_s0 }
   0x2   :  { %3615 = sst [smem:[#allocation26_spill]] %s3589_s1 }
   0x3   :  { %3616 = sst [smem:[#allocation27_spill]] %s3590_s2 }
   0x4   :  { %3617 = sst [smem:[#allocation28_spill]] %s3591_s3 }
   0x5   :  { %3618 = sst [smem:[#allocation29_spill]] %s3592_s4 }
   0x6   :  { %10 = vsyncpa [#allocation4], 0 }
   0x7   :  { %12 = vsyncpa [#allocation4 + $0x1], 0 }
   0x8   :  { %13 = vsyncpa [#allocation7], 0 }
   0x9   :  { %15 = vsyncpa [#allocation7 + $0x1], 0 }
   0xa   :  { %16 = vsyncpa [#allocation5], 0 }
   0xb   :  { %18 = vsyncpa [#allocation5 + $0x1], 0 }
   0xc   :  { %19 = vsyncpa [#allocation10], 0 }
   0xd   :  { %21 = vsyncpa [#allocation10 + $0x1], 0  ;;  %s2908_s15 = smov 0   ;;  %s2910_s16 = smov 0  }
   0xe   :  { %s2912_s17 = smov 0   ;;  %s2914_s18 = smov 0  }
   0xf   :  { %s2916_s19 = smov 0   ;;  %s2918_s20 = smov 0  }
  0x10   :  { %s2920_s21 = smov 0   ;;  %s2922_s22 = smov 0  }
  0x11   :  { %s2924_s23 = smov 0   ;;  %s2926_s24 = smov 0  }
  0x12   :  { %s2928_s25 = smov 0  }
  0x13 LB: > { %3619 = sst [smem:[#allocation15_spill]] %s2843_s18  ;;  %s2069_s26 = sadd.s32 4294967295, %s2871_s25   ;;  %s2871_s25 = sphi %s2928_s25, %s27_s25   ;;  %s2867_s24 = sphi %s2926_s24, %s3672_s24   ;;  %s2863_s23 = sphi %s2924_s23, %s3671_s23   ;;  %s2859_s22 = sphi %s2922_s22, %s3670_s22   ;;  %s2855_s21 = sphi %s2920_s21, %s3669_s21   ;;  %s2851_s20 = sphi %s2918_s20, %s3668_s20   ;;  %s2847_s19 = sphi %s2916_s19, %s3667_s19   ;;  %s2843_s18 = sphi %s2914_s18, %s3666_s18   ;;  %s2839_s17 = sphi %s2912_s17, %s3675_s17   ;;  %s2835_s16 = sphi %s2910_s16, %s3674_s16   ;;  %s2831_s15 = sphi %s2908_s15, %s3673_s15  }
  0x14   : > { %3620 = sst [smem:[#allocation16_spill]] %s2847_s19  ;;  %s36_s28 = sadd.s32 1, %s2863_s23 }
  0x15   : > { %3621 = sst [smem:[#allocation17_spill]] %s2851_s20  ;;  %s39_s29 = sadd.s32 1, %s2867_s24 }
  0x16   : > { %3622 = sst [smem:[#allocation18_spill]] %s2863_s23  ;;  %p37_p0 = scmp.ge.s32.totalorder %s36_s28, 8 }
  0x17   : > { %3623 = sst [smem:[#allocation19_spill]] %s2867_s24  ;;  %s2071_s30 = sshll.u32 %s2867_s24, 1 }
  0x18   : > { %s44_s5 = ssub.s32 1, %s2071_s30  ;;  %s46_s6 = smul.u32 7, %s2867_s24 }
  0x19   : > { %s3677_s28 = smov (%p37_p0, %s36_s28), 0  ;;  %s3679_s29 = smov (!%p37_p0, %s39_s29), %s2867_s24 }
  0x1a   : > { %3624 = sst [smem:[#allocation20_spill]] %s3677_s28  ;;  %s45_s7 = smul.u32 %s2863_s23, %s44_s5 }
  0x1b   : > { %s58_s8 = sadd.s32 1, %s2851_s20  ;;  %p41_p1 = scmp.ge.s32.totalorder %s3679_s29, 2 }
  0x1c   : > { %p65_p2 = scmp.ne.s32.totalorder %s2851_s20, %s2847_s19  ;;  %s2976_s9 = sadd.s32 %s46_s6, %s45_s7 }
  0x1d   : > { %p3603_p3 = scmp.eq.s32.totalorder %s2871_s25, 0  ;;  %s3681_s29 = smov (%p41_p1, %s3679_s29), 0 }
  0x1e   : > { %3625 = sst [smem:[#allocation21_spill]] %s3681_s29  ;;  %p71_p5 = scmp.ne.s32.totalorder %s2847_s19, %s2843_s18 }
  0x1f   : > { %p2986_p4 = por %p3603_p3, %p65_p2  ;;  %s2072_s11 = sshll.u32 %s3681_s29, 1 }
  0x20   : > { %s51_s12 = smul.u32 7, %s3681_s29  ;;  %s49_s13 = ssub.s32 1, %s2072_s11 }
  0x21   : > { %s2996_s14 = ssub.s32 %s2867_s24, %s3681_s29  ;;  %s50_s30 = smul.u32 %s49_s13, %s3677_s28 }
  0x22   : > { %p2999_p6 = scmp.eq.s32.totalorder %s2069_s26, 0  ;;  %p3004_p8 = scmp.eq.s32.totalorder %s2069_s26, 15 }
  0x23   : > { %s52_s7 = sadd.s32 %s51_s12, %s50_s30  ;;  %s3632_s26 = sadd.s32 4294967294, %s2871_s25  }
  0x24   : > { %s3627_s5 = scalar_select %p2999_p6, 1, 0 }
  0x25   : > { %p3013_p9 = por %p2999_p6, %p71_p5  ;;  %s54_s13 = ssub.s32 %s2976_s9, %s52_s7 }
  0x26   : > { %p3023_p10 = por %p3004_p8, %p65_p2  ;;  %s55_s29 = sor.u32 %s54_s13, %s2996_s14 }
  0x27   : > { %s3629_s11 = scalar_select %p3013_p9, 1, 0 }
  0x28   : > { %s3630_s27 = scalar_select %p3023_p10, 1, 0 }
  0x29   : > { %p3030_p11 = scmp.eq.s32.totalorder %s3632_s26, 15  ;;  %p56_p12 = scmp.eq.s32.totalorder %s55_s29, 0 }
  0x2a   : > { %3631 = sst [smem:[#allocation22_spill]] %s3630_s27  ;;  %p3602_p0 = scmp.lt.s32.totalorder %s2871_s25, 16 }
  0x2b   : > { %s3633_s28 = scalar_select %p3030_p11, 1, 0 }
  0x2c   : > { %p3039_p13 = por %p3030_p11, %p71_p5  ;;  %s211_s7 = sand.u32 1, %s2851_s20  }
  0x2d   : > { %s3045_s30 = scalar_select %p56_p12, %s2851_s20, %s58_s8  }
  0x2e   : > { %s3634_s12 = scalar_select %p3039_p13, 1, 0 }
  0x2f   : > { %3635 = sst [smem:[#allocation23_spill]] %s3045_s30  ;;  %s2518_s23 = smul.u32 3, %s2976_s9 }
  0x30   : > { %s2517_s13 = smul.u32 24, %s211_s7  ;;  %p3054_p1 = pnand %p3602_p0, %p2986_p4 }
  0x31   : > { %s2519_s3 = smul.u32 24, %s2867_s24  ;;  %s3637_s0 = sld [smem:[#allocation25_spill]] }
  0x32   : > { %s215_s18 = scalar_lea.vmem [#allocation3], %s2517_s13  ;;  %s3066_s10 = scalar_lea.sflag [#allocation4], %s211_s7 }
  0x33   : > { %s226_s29 = sadd.s32 %s2519_s3, %s2518_s23  ;;  %s229_s4 = sshll.u32 %s215_s18, 4  ;;  %s3058_s4 = int_to_ptr.vmem [resolvable:$true] %s229_s4 }
  0x34   : > { %s2078_s27 = sshll.u32 %s226_s29, 7  ;;  %p2655_p5 = pneg %p3054_p1 }
  0x37   : > { %s3063_s9 = scalar_lea.hbm %s3637_s0, %s2078_s27  ;;  %s2658_s23 = scalar_lea.hbm %s3637_s0, 6144 }
  0x38   : > { %s2653_s20 = scalar_lea.hbm %s3063_s9, 384  ;;  %p2659_p3 = scmp.lt.u32.totalorder %s3063_s9, %s3637_s0 }
  0x39   : > { %p2654_p4 = scmp.ne.s32.totalorder %s3063_s9, %s2653_s20  ;;  %p2660_p7 = scmp.lt.u32.totalorder %s2658_s23, %s2653_s20 }
  0x3a   : > { %p2662_p13 = scmp.lt.u32.totalorder %s2653_s20, %s3063_s9 }
  0x3b   : > { %p2656_p12 = pnand %p2655_p5, %p2654_p4  ;;  %p2661_p2 = por %p2660_p7, %p2659_p3 }
  0x3d   : > { %p2657_p0 = pneg %p2656_p12  ;;  %p2663_p10 = por %p2662_p13, %p2661_p2 }
  0x3f   : > { %p2664_p9 = pnand %p2663_p10, %p2657_p0 }
  0x41   : > { %2667 = shalt.err (!%p2664_p9)
}
  0x42   : > { %s2668_s7 = scalar_lea.vmem %s3058_s4, 384  ;;  %s2873_s13 = smov [#allocation3]  }
  0x43   : > { %p2669_p4 = scmp.ne.s32.totalorder %s3058_s4, %s2668_s7  ;;  %s2673_s29 = sshll.u32 %s2873_s13, 4  ;;  %s2674_s29 = int_to_ptr.vmem [resolvable:$false] %s2673_s29 }
  0x44   : > { %s2675_s8 = scalar_lea.vmem %s2674_s29, 768  ;;  %p2676_p6 = scmp.lt.s32.totalorder %s3058_s4, %s2674_s29 }
  0x45   : > { %p2671_p12 = pnand %p2669_p4, %p2655_p5  ;;  %p2677_p3 = scmp.lt.s32.totalorder %s2675_s8, %s2668_s7 }
  0x47   : > { %p2672_p11 = pneg %p2671_p12  ;;  %p2678_p7 = por %p2677_p3, %p2676_p6 }
  0x49   : > { %p2679_p13 = pnand %p2678_p7, %p2672_p11 }
  0x4b   : > { %2682 = shalt.err (!%p2679_p13)
}
  0x4c   : > { %s3608_s20 = smov 128   ;;  %s3609_s3 = smov 8  }
  0x4d   : > { %2536 = dma.hbm_to_vmem [thread:$0]  (!%p3054_p1), %s3063_s9, 384, %s3058_s4, %s3066_s10, %s3608_s20, %s3608_s20, %s3609_s3  }
  0x4e   : > { %p265_p6 = scmp.lt.s32.totalorder %s2871_s25, 17  ;;  %p3638_p9 = scmp.ge.s32.totalorder %s2871_s25, 1 }
  0x4f   : > { %s84_s23 = sadd.s32 1, %s2839_s17  ;;  %p91_p11 = scmp.ne.s32.totalorder %s2839_s17, %s2835_s16 }
  0x50   : > { %p3100_p10 = pnand %p3638_p9, %p265_p6  ;;  %p3640_p0 = scmp.eq.s32.totalorder %s2996_s14, 0 }
  0x51   : > { %p3642_p2 = scmp.eq.s32.totalorder %s2871_s25, 0  ;;  %p97_p4 = scmp.ne.s32.totalorder %s2835_s16, %s2831_s15 }
  0x52   : > { %s3110_s27 = scalar_select %p3640_p0, %s2839_s17, %s84_s23  }
  0x53   : > { %p93_p5 = por %p91_p11, %p3642_p2  ;;  %p3118_p12 = por %p3004_p8, %p91_p11 }
  0x54   : > { %3641 = sst [smem:[#allocation24_spill]] %s3110_s27  ;;  %s239_s4 = sand.u32 1, %s2839_s17  }
  0x55   : > { %s3643_s26 = scalar_select %p3118_p12, 1, 0 }
  0x56   : > { %p3644_p1 = scmp.ne.s32.totalorder %s3627_s5, 0  ;;  %p3646_p7 = scmp.ne.s32.totalorder %s3633_s28, 0 }
  0x57   : > { %s2520_s14 = smul.u32 96, %s239_s4  ;;  %p3648_p6 = scmp.lt.s32.totalorder %s2871_s25, 16 }
  0x58   : > { %p3125_p3 = por %p97_p4, %p3644_p1  ;;  %p3131_p13 = por %p3646_p7, %p97_p4 }
  0x59   : > { %s2521_s30 = smul.u32 1536, %s2867_s24  ;;  %p3138_p9 = pnand %p3648_p6, %p93_p5 }
  0x5a   : > { %s3645_s9 = scalar_select %p3125_p3, 1, 0 }
  0x5b   : > { %s3647_s10 = scalar_select %p3131_p13, 1, 0 }
  0x5c   : > { %s3650_s1 = sld [smem:[#allocation26_spill]]  ;;  %s243_s28 = scalar_lea.vmem [#allocation6], %s2520_s14 }
  0x5d   : > { %s250_s29 = sshll.u32 %s243_s28, 4  ;;  %s3149_s8 = scalar_lea.sflag [#allocation7], %s239_s4  ;;  %s3147_s29 = int_to_ptr.vmem [resolvable:$true] %s250_s29 }
  0x5e   : > { %p2685_p11 = pneg %p3138_p9 }
  0x62   : > { %s3145_s5 = scalar_lea.hbm %s3650_s1, %s2521_s30  ;;  %s2688_s13 = scalar_lea.hbm %s3650_s1, 3072 }
  0x63   : > { %s2683_s23 = scalar_lea.hbm %s3145_s5, 1536  ;;  %p2689_p5 = scmp.lt.u32.totalorder %s3145_s5, %s3650_s1 }
  0x64   : > { %p2684_p8 = scmp.ne.s32.totalorder %s3145_s5, %s2683_s23  ;;  %p2690_p4 = scmp.lt.u32.totalorder %s2688_s13, %s2683_s23 }
  0x65   : > { %p2692_p7 = scmp.lt.u32.totalorder %s2683_s23, %s3145_s5 }
  0x66   : > { %p2686_p0 = pnand %p2685_p11, %p2684_p8  ;;  %p2691_p1 = por %p2690_p4, %p2689_p5 }
  0x68   : > { %p2687_p2 = pneg %p2686_p0  ;;  %p2693_p6 = por %p2692_p7, %p2691_p1 }
  0x6a   : > { %p2694_p13 = pnand %p2693_p6, %p2687_p2 }
  0x6c   : > { %2697 = shalt.err (!%p2694_p13)
}
  0x6d   : > { %s2698_s4 = scalar_lea.vmem %s3147_s29, 1536  ;;  %s2876_s14 = smov [#allocation6]  }
  0x6e   : > { %p2699_p8 = scmp.ne.s32.totalorder %s3147_s29, %s2698_s4  ;;  %s2703_s28 = sshll.u32 %s2876_s14, 4  ;;  %s2704_s28 = int_to_ptr.vmem [resolvable:$false] %s2703_s28 }
  0x6f   : > { %s2705_s20 = scalar_lea.vmem %s2704_s28, 3072  ;;  %p2706_p3 = scmp.lt.s32.totalorder %s3147_s29, %s2704_s28 }
  0x70   : > { %p2701_p0 = pnand %p2699_p8, %p2685_p11  ;;  %p2707_p5 = scmp.lt.s32.totalorder %s2705_s20, %s2698_s4 }
  0x72   : > { %p2702_p12 = pneg %p2701_p0  ;;  %p2708_p4 = por %p2707_p5, %p2706_p3 }
  0x74   : > { %p2709_p1 = pnand %p2708_p4, %p2702_p12 }
  0x76   : > { %2712 = shalt.err (!%p2709_p1)
}
  0x77   : > { %s3651_s3 = smov 8   ;;  %s3652_s23 = smov 128  }
  0x78   : > { %2539 = dma.hbm_to_vmem [thread:$0]  (!%p3138_p9), %s3145_s5, 1536, %s3147_s29, %s3149_s8, %s3652_s23, %s3652_s23, %s3651_s3  }
  0x79   : > { %269 = sbr.rel (%p3100_p10) target bundleno = 535 (0x217), region = 32  ;;  %s3183_s30 = sand.u32 (!%p3100_p10), 1, %s2847_s19  }
  0x7a   : > { %s2522_s7 = smul.u32 (!%p3100_p10), 24, %s3183_s30  ;;  %s272_s13 = scalar_lea.sflag (!%p3100_p10), [#allocation4], %s3183_s30 }
  0x7b   : > { %p3653_p12 = scmp.ne.s32.totalorder (!%p3100_p10), %s3629_s11, 0 }
  0x7c   : > { %s3187_s4 = scalar_lea.vmem (!%p3100_p10), [#allocation3], %s2522_s7 }
  0x80   : > { %2814 = dma.done.wait (%p3653_p12), %s272_s13, 384  }
  0x81   : > { %2816 = vsyncadd (%p3653_p12), %s272_s13, 4294966912  ;;  %s3194_s6 = sand.u32 1, %s2835_s16   ;;  %p3654_p10 = scmp.ne.s32.totalorder %s3645_s9, 0 }
  0x82   : > { %s2523_s18 = smul.u32 96, %s3194_s6  ;;  %s281_s5 = scalar_lea.sflag [#allocation7], %s3194_s6 }
  0x84   : > { %s3198_s29 = scalar_lea.vmem [#allocation6], %s2523_s18 }
  0x85   : > { %2818 = dma.done.wait (%p3654_p10), %s281_s5, 1536  }
  0x86   : > { %2820 = vsyncadd (%p3654_p10), %s281_s5, 4294965760  ;;  %s2081_s11 = sshll.u32 %s3183_s30, 3  ;;  %s2082_s8 = sshll.u32 %s3194_s6, 3 }
  0x87   : > { %p328_p3 = scmp.lt.s32.totalorder %s2859_s22, 1  ;;  %s3655_s2 = sld [smem:[#allocation27_spill]] }
  0x88   : > { %s3213_s7 = scalar_lea.vmem [#allocation8], %s2081_s11  ;;  %s3215_s13 = scalar_lea.vmem [#allocation9], %s2082_s8 }
  0x89   : > { %s329_s14 = scalar_select %p328_p3, %s2859_s22, 1 }
  0x8a   : > { %p2083_p13 = scmp.ne.s32.totalorder %s2855_s21, 0 }
  0x8b   : > { %s2524_s28 = smul.u32 3, %s329_s14  ;;  %vm341_vm0 = vcmask (!%p2083_p13), 261120   ;;  %v2877_v0 = vmov (!%p2083_p13), 0.0  }
  0x8c   : > { %340 = sbr.rel (%p2083_p13) target bundleno = 147 (0x93), region = 44  ;;  %342 = vst.msk [vmem:[#allocation2] sm:$0xff] (!%p2083_p13), %vm341_vm0, %v2877_v0 }
  0x8d   : > { %s3211_s23 = scalar_lea.vmem %s3655_s2, %s2524_s28 }
  0x93 PF: > { %v344_v1 = vld [vmem:[%s3198_s29] sm:$0xff]  ;;  %v345_v2 = vld [vmem:[%s3198_s29 + $0x8] sm:$0xff]  ;;  %v2878_v4 = vmov 0.0|0.0   ;;  %v346_v9 = vld [vmem:[%s3198_s29 + $0x10] sm:$0xff]  ;;  %vm2879_vm1 = vmmov 0   ;;  %v2880_v16 = vmov 0.0  }
  0x94   : > { %v2085_v3 = vld [vmem:[%s3198_s29 + $0x20] sm:$0xff]  ;;  %2398 = vmatprep.subr.bf16.mxu1 %v2878_v4  ;;  %2434 = vmatprep.subr.bf16.mxu0 %v2878_v4  ;;  %v360_v5 = vand.u32 4294901760, %v344_v1  ;;  %v363_v6 = vand.u32 4294901760, %v345_v2  ;;  %v2086_v7 = vld [vmem:[%s3198_s29 + $0x28] sm:$0xff]  ;;  %v347_v10 = vld [vmem:[%s3198_s29 + $0x18] sm:$0xff]  ;;  %v366_v12 = vand.u32 4294901760, %v346_v9 }
  0x95   : > { %v858_v8 = vand.u32 4294901760, %v2085_v3  ;;  %v861_v11 = vand.u32 4294901760, %v2086_v7  ;;  %v369_v13 = vand.u32 4294901760, %v347_v10  ;;  %v2087_v14 = vld [vmem:[%s3198_s29 + $0x30] sm:$0xff]  ;;  %v2088_v15 = vld [vmem:[%s3198_s29 + $0x38] sm:$0xff]  ;;  %2208 = vmatprep.mubr.msk.f32.mxu1 %vm2879_vm1, %v2880_v16  ;;  %2274 = vmatprep.mubr.msk.f32.mxu0 %vm2879_vm1, %v2880_v16  ;;  %v3238_v20 = vld [vmem:[#allocation2] sm:$0xff] }
  0x96   : > { %v3232_v17 = vpack.c.bf16 %v363_v6, %v360_v5  ;;  %v3234_v18 = vsub.f32 %v344_v1, %v360_v5  ;;  %v3236_v19 = vsub.f32 %v345_v2, %v363_v6  ;;  %v3244_v23 = vsub.f32 %v346_v9, %v366_v12  ;;  %v2091_v52 = vld [vmem:[%s3198_s29 + $0x40] sm:$0xff]  ;;  %v2092_v53 = vld [vmem:[%s3198_s29 + $0x48] sm:$0xff]  ;;  %v2093_v60 = vld [vmem:[%s3198_s29 + $0x50] sm:$0xff]  ;;  %p2101_p9 = scmp.ne.s32.totalorder %s2855_s21, 7 }
  0x97   : > { %v3240_v21 = vpack.c.bf16 %v861_v11, %v858_v8  ;;  %v3242_v22 = vpack.c.bf16 %v369_v13, %v366_v12  ;;  %v3247_v24 = vsub.f32 %v347_v10, %v369_v13  ;;  %v864_v25 = vand.u32 4294901760, %v2087_v14  ;;  %v2094_v61 = vld [vmem:[%s3198_s29 + $0x58] sm:$0xff] }
  0x98   : > { %2400 = vmatpush3.bf16.msra.mxu1 %v3232_v17  ;;  %v867_v26 = vand.u32 4294901760, %v2088_v15  ;;  %vm355_vm2 = vcmask 261120   ;;  %v441_v28 = vand.u32 4294901760, %v3234_v18  ;;  %v448_v29 = vand.u32 4294901760, %v3236_v19 }
  0x99   : > { %2436 = vmatpush3.bf16.msra.mxu0 %v3240_v21  ;;  %2401 = vmatprep.subr.bf16.mxu1 %v2878_v4  ;;  %v357_v27 = vsel %vm355_vm2, %v3238_v20, 0  ;;  %v455_v34 = vand.u32 4294901760, %v3244_v23  ;;  %v462_v35 = vand.u32 4294901760, %v3247_v24  ;;  %v3268_v36 = vsub.f32 %v2085_v3, %v858_v8 }
  0x9a   : > { %2437 = vmatprep.subr.bf16.mxu0 %v2878_v4  ;;  %v3256_v30 = vpack.c.bf16 %v867_v26, %v864_v25  ;;  %v3258_v31 = vand.u32 4294901760, %v357_v27  ;;  %v442_v32 = vsub.f32 %v3234_v18, %v441_v28  ;;  %v449_v33 = vsub.f32 %v3236_v19, %v448_v29 }
  0x9b   : > { %v3270_v37 = vsub.f32 %v2086_v7, %v861_v11  ;;  %v456_v41 = vsub.f32 %v3244_v23, %v455_v34  ;;  %v463_v42 = vsub.f32 %v3247_v24, %v462_v35  ;;  %v3288_v44 = vsub.f32 %v2087_v14, %v864_v25 }
  0x9c   : > { %2403 = vmatpush3.bf16.msra.mxu1 %v3242_v22  ;;  %v3274_v38 = vsub.f32 %v357_v27, %v3258_v31  ;;  %v443_v39 = vand.u32 4294901760, %v442_v32  ;;  %v450_v40 = vand.u32 4294901760, %v449_v33  ;;  %v3294_v47 = vsub.f32 %v2088_v15, %v867_v26 }
  0x9d   : > { %2439 = vmatpush3.bf16.msra.mxu0 %v3256_v30  ;;  %2404 = vmatprep.subr.bf16.mxu1 %v2878_v4  ;;  %v2447_v46 = vpack.c.bf16 %v3270_v37, %v3268_v36  ;;  %v457_v49 = vand.u32 4294901760, %v456_v41  ;;  %v464_v50 = vand.u32 4294901760, %v463_v42  ;;  %v939_v54 = vand.u32 4294901760, %v3268_v36 }
  0x9e   : > { %v3285_v43 = vand.u32 4294901760, %v3274_v38  ;;  %2446 = vmatprep.subr.bf16.mxu0 %v2878_v4  ;;  %v2405_v48 = vpack.c.bf16 %v450_v40, %v443_v39  ;;  %v946_v55 = vand.u32 4294901760, %v3270_v37  ;;  %v2450_v57 = vpack.c.bf16 %v3294_v47, %v3288_v44 }
  0x9f   : > { %v2408_v56 = vpack.c.bf16 %v464_v50, %v457_v49  ;;  %v1356_v58 = vand.u32 4294901760, %v2091_v52  ;;  %v1359_v59 = vand.u32 4294901760, %v2092_v53  ;;  %v2411_v62 = vpack.c.bf16 %v3236_v19, %v3234_v18 }
  0xa0   : > { %v431_v45 = vsub.f32 %v3274_v38, %v3285_v43  ;;  %v2459_v63 = vpack.c.bf16 %v946_v55, %v939_v54  ;;  %v953_v0 = vand.u32 4294901760, %v3288_v44  ;;  %v960_v1 = vand.u32 4294901760, %v3294_v47 }
  0xa1   : > { %v3322_v2 = vsub.f32 %v2091_v52, %v1356_v58  ;;  %v3324_v3 = vsub.f32 %v2092_v53, %v1359_v59  ;;  %v1362_v5 = vand.u32 4294901760, %v2093_v60  ;;  %v1365_v6 = vand.u32 4294901760, %v2094_v61 }
  0xa2   : > { %v3296_v51 = vand.u32 4294901760, %v431_v45  ;;  %v2414_v7 = vpack.c.bf16 %v3247_v24, %v3244_v23  ;;  %v2462_v8 = vpack.c.bf16 %v960_v1, %v953_v0  ;;  %v3348_v13 = vpack.c.bf16 %v1359_v59, %v1356_v58 }
  0xa3   : > { %v3336_v9 = vsub.f32 %v2093_v60, %v1362_v5  ;;  %v3338_v10 = vsub.f32 %v2094_v61, %v1365_v6  ;;  %v1437_v11 = vand.u32 4294901760, %v3322_v2  ;;  %v1444_v12 = vand.u32 4294901760, %v3324_v3 }
  0xa4   : > { %2209 = vmatmul.mubr.f32.vlgmr.msra.gmra.mrb[0].mxu1 %v3296_v51  ;;  %2275 = vmatmul.mubr.f32.vlgmr.msra.gmra.mrb[0].mxu0 %v3296_v51  ;;  %v3362_v27 = vpack.c.bf16 %v1365_v6, %v1362_v5  ;;  %v2423_v41 = vpack.c.bf16 %v448_v29, %v441_v28  ;;  %v2426_v18 = vpack.c.bf16 %v462_v35, %v455_v34 }
  0xa5   : > { %2406 = vmatpush3.bf16.msra.mxu1 %v2405_v48  ;;  %2448 = vmatpush3.bf16.msra.mxu0 %v2447_v46  ;;  %v1438_v14 = vsub.f32 %v3322_v2, %v1437_v11  ;;  %v1445_v15 = vsub.f32 %v3324_v3, %v1444_v12  ;;  %v1451_v25 = vand.u32 4294901760, %v3336_v9  ;;  %v1458_v26 = vand.u32 4294901760, %v3338_v10 }
  0xa6   : > { %2407 = vmatprep.subr.bf16.mxu1 %v2878_v4  ;;  %2449 = vmatprep.subr.bf16.mxu0 %v2878_v4  ;;  %v2483_v28 = vpack.c.bf16 %v3324_v3, %v3322_v2  ;;  %v940_v23 = vsub.f32 %v3268_v36, %v939_v54  ;;  %v947_v24 = vsub.f32 %v3270_v37, %v946_v55  ;;  %v1840_v2 = vld [vmem:[%s3187_s4] sm:$0xff] }
  0xa7   : > { %2219 = vmatprep.mubr.msk.f32.mxu1 %vm2879_vm1, %v2880_v16  ;;  %2296 = vmatprep.mubr.msk.f32.mxu0 %vm2879_vm1, %v2880_v16  ;;  %v1439_v32 = vand.u32 4294901760, %v1438_v14  ;;  %v1446_v33 = vand.u32 4294901760, %v1445_v15  ;;  %v1452_v39 = vsub.f32 %v3336_v9, %v1451_v25  ;;  %v1459_v40 = vsub.f32 %v3338_v10, %v1458_v26 }
  0xa8   : > { %v2486_v29 = vpack.c.bf16 %v3338_v10, %v3336_v9  ;;  %v941_v34 = vand.u32 4294901760, %v940_v23  ;;  %v948_v35 = vand.u32 4294901760, %v947_v24  ;;  %v954_v36 = vsub.f32 %v3288_v44, %v953_v0 }
  0xa9   : > { %2409 = vmatpush3.bf16.msra.mxu1 %v2408_v56  ;;  %2451 = vmatpush3.bf16.msra.mxu0 %v2450_v57  ;;  %v2477_v42 = vpack.c.bf16 %v1446_v33, %v1439_v32  ;;  %v1453_v45 = vand.u32 4294901760, %v1452_v39  ;;  %v1460_v46 = vand.u32 4294901760, %v1459_v40  ;;  %v961_v37 = vsub.f32 %v3294_v47, %v960_v1  ;;  %v2098_v39 = vld [vmem:[%s3187_s4 + $0x8] sm:$0xff] }
  0xaa   : > { %2410 = vmatprep.subr.bf16.mxu1 %v2878_v4  ;;  %2458 = vmatprep.subr.bf16.mxu0 %v2878_v4  ;;  %v955_v48 = vand.u32 4294901760, %v954_v36 }
  0xab   : > { %v2480_v19 = vpack.c.bf16 %v1460_v46, %v1453_v45  ;;  %v962_v44 = vand.u32 4294901760, %v961_v37  ;;  %v2096_v46 = vld [vmem:[%s3211_s23 + $0x2] ss:$0 sm:$0xff] }
  0xac   : > { %2220 = vmatmul.mubr.f32.vlgmr.msra.gmra.mrb[2].mxu1 %v3258_v31  ;;  %2297 = vmatmul.mubr.f32.vlgmr.msra.gmra.mrb[2].mxu0 %v3274_v38 }
  0xad   : > { %2412 = vmatpush3.bf16.msra.mxu1 %v2411_v62  ;;  %2460 = vmatpush3.bf16.msra.mxu0 %v2459_v63  ;;  %v2444_v47 = vpack.c.bf16 %v962_v44, %v955_v48 }
  0xae   : > { %2413 = vmatprep.subr.bf16.mxu1 %v2878_v4  ;;  %2461 = vmatprep.subr.bf16.mxu0 %v2878_v4 }
  0xaf   : > { %2230 = vmatprep.mubr.msk.f32.mxu1 %vm2879_vm1, %v2880_v16  ;;  %2318 = vmatprep.mubr.msk.f32.mxu0 %vm2879_vm1, %v2880_v16 }
  0xb1   : > { %2415 = vmatpush3.bf16.msra.mxu1 %v2414_v7  ;;  %2463 = vmatpush3.bf16.msra.mxu0 %v2462_v8  ;;  %v2090_v7 = vld [vmem:[%s3211_s23 + $0x1] ss:$0 sm:$0xff] }
  0xb2   : > { %2416 = vmatprep.subr.bf16.mxu1 %v2878_v4  ;;  %2470 = vmatprep.subr.bf16.mxu0 %v2878_v4 }
  0xb4   : > { %2231 = vmatmul.mubr.f32.vlgmr.msra.gmra.mrb[4].mxu1 %v3274_v38  ;;  %2319 = vmatmul.mubr.f32.vlgmr.msra.gmra.mrb[4].mxu0 %v3258_v31 }
  0xb5   : > { %2418 = vmatpush3.bf16.msra.mxu1 %v3232_v17  ;;  %2472 = vmatpush3.bf16.msra.mxu0 %v3348_v13 }
  0xb6   : > { %2419 = vmatprep.subr.bf16.mxu1 %v2878_v4  ;;  %2473 = vmatprep.subr.bf16.mxu0 %v2878_v4 }
  0xb7   : > { %2241 = vmatprep.mubr.msk.f32.mxu1 %vm2879_vm1, %v2880_v16  ;;  %2340 = vmatprep.mubr.msk.f32.mxu0 %vm2879_vm1, %v2880_v16 }
  0xb9   : > { %2421 = vmatpush3.bf16.msra.mxu1 %v3242_v22  ;;  %2475 = vmatpush3.bf16.msra.mxu0 %v3362_v27 }
  0xba   : > { %2422 = vmatprep.subr.bf16.mxu1 %v2878_v4  ;;  %2476 = vmatprep.subr.bf16.mxu0 %v2878_v4 }
  0xbc   : > { %2242 = vmatmul.mubr.f32.vlgmr.msra.gmra.mrb[6].mxu1 %v3285_v43  ;;  %2341 = vmatmul.mubr.f32.vlgmr.msra.gmra.mrb[6].mxu0 %v3296_v51  ;;  %v2084_v51 = vld [vmem:[%s3211_s23] ss:$0 sm:$0xff] }
  0xbd   : > { %2424 = vmatpush3.bf16.msra.mxu1 %v2423_v41  ;;  %2478 = vmatpush3.bf16.msra.mxu0 %v2477_v42 }
  0xbe   : > { %2425 = vmatprep.subr.bf16.mxu1 %v2878_v4  ;;  %2479 = vmatprep.subr.bf16.mxu0 %v2878_v4 }
  0xbf   : > { %2252 = vmatprep.mubr.msk.f32.mxu1 %vm2879_vm1, %v2880_v16  ;;  %2351 = vmatprep.mubr.msk.f32.mxu0 %vm2879_vm1, %v2880_v16 }
  0xc1   : > { %2427 = vmatpush3.bf16.msra.mxu1 %v2426_v18  ;;  %2481 = vmatpush3.bf16.msra.mxu0 %v2480_v19 }
  0xc2   : > { %2428 = vmatprep.subr.bf16.mxu1 %v2878_v4  ;;  %2482 = vmatprep.subr.bf16.mxu0 %v2878_v4 }
  0xc4   : > { %2253 = vmatmul.mubr.f32.vlgmr.msra.gmra.mrb[8].mxu1 %v3258_v31  ;;  %2352 = vmatmul.mubr.f32.vlgmr.msra.gmra.mrb[6].mxu0 %v3258_v31 }
  0xc5   : > { %2430 = vmatpush3.bf16.msra.mxu1 %v3232_v17  ;;  %2484 = vmatpush3.bf16.msra.mxu0 %v2483_v28  ;;  %v2441_v17 = vpack.c.bf16 %v948_v35, %v941_v34 }
  0xc6   : > { %2431 = vmatprep.subr.bf16.mxu1 %v2878_v4  ;;  %2485 = vmatprep.subr.bf16.mxu0 %v2878_v4 }
  0xc7   : > { %2263 = vmatprep.mubr.msk.f32.mxu1 %vm2879_vm1, %v2880_v16  ;;  %2362 = vmatprep.mubr.msk.f32.mxu0 %vm2879_vm1, %v2880_v16 }
  0xc9   : > { %2433 = vmatpush3.bf16.msra.mxu1 %v3242_v22  ;;  %2487 = vmatpush3.bf16.msra.mxu0 %v2486_v29  ;;  %v2495_v22 = vpack.c.bf16 %v1444_v12, %v1437_v11  ;;  %v2100_v29 = vld [vmem:[%s3187_s4 + $0x10] sm:$0xff] }
  0xca   : > { %2440 = vmatprep.subr.bf16.mxu1 %v2878_v4  ;;  %2488 = vmatprep.subr.bf16.mxu0 %v2878_v4 }
  0xcc   : > { %2264 = vmatmul.mubr.f32.vlgmr.msra.gmra.mrb[10].mxu1 %v3258_v31  ;;  %2363 = vmatmul.mubr.f32.vlgmr.msra.gmra.mrb[6].mxu0 %v3274_v38  ;;  %v2498_v38 = vpack.c.bf16 %v1458_v26, %v1451_v25 }
  0xcd   : > { %2442 = vmatpush3.bf16.msra.mxu1 %v2441_v17  ;;  %2490 = vmatpush3.bf16.msra.mxu0 %v3348_v13 }
  0xce   : > { %2443 = vmatprep.subr.bf16.mxu1 %v2878_v4  ;;  %2491 = vmatprep.subr.bf16.mxu0 %v2878_v4 }
  0xcf   : > { %2285 = vmatprep.mubr.msk.f32.mxu1 %vm2879_vm1, %v2880_v16  ;;  %2373 = vmatprep.mubr.msk.f32.mxu0 %vm2879_vm1, %v2880_v16 }
  0xd1   : > { %2445 = vmatpush3.bf16.msra.mxu1 %v2444_v47  ;;  %2493 = vmatpush3.bf16.msra.mxu0 %v3362_v27 }
  0xd2   : > { %2452 = vmatprep.subr.bf16.mxu1 %v2878_v4  ;;  %2494 = vmatprep.subr.bf16.mxu0 %v2878_v4 }
  0xd4   : > { %2286 = vmatmul.mubr.f32.vlgmr.msra.gmra.mrb[12].mxu1 %v3258_v31  ;;  %2374 = vmatmul.mubr.f32.vlgmr.msra.gmra.mrb[6].mxu0 %v3285_v43 }
  0xd5   : > { %2454 = vmatpush3.bf16.msra.mxu1 %v3240_v21  ;;  %2496 = vmatpush3.bf16.msra.mxu0 %v2495_v22 }
  0xd6   : > { %2455 = vmatprep.subr.bf16.mxu1 %v2878_v4  ;;  %2497 = vmatprep.subr.bf16.mxu0 %v2878_v4 }
  0xd7   : > { %2307 = vmatprep.mubr.msk.f32.mxu1 %vm2879_vm1, %v2880_v16  ;;  %2384 = vmatprep.mubr.msk.f32.mxu0 %vm2879_vm1, %v2880_v16 }
  0xd9   : > { %2457 = vmatpush3.bf16.msra.mxu1 %v3256_v30  ;;  %2499 = vmatpush3.bf16.msra.mxu0 %v2498_v38 }
  0xda   : > { %2464 = vmatprep.subr.bf16.mxu1 %v2878_v4  ;;  %2500 = vmatprep.subr.bf16.mxu0 %v2878_v4 }
  0xdc   : > { %2308 = vmatmul.mubr.f32.vlgmr.msra.gmra.mrb[14].mxu1 %v3285_v43  ;;  %2385 = vmatmul.mubr.f32.vlgmr.msra.gmra.mrb[6].mxu0 %v3258_v31 }
  0xdd   : > { %2466 = vmatpush3.bf16.msra.mxu1 %v3240_v21  ;;  %2502 = vmatpush3.bf16.msra.mxu0 %v3348_v13 }
  0xde   : > { %2467 = vmatprep.subr.bf16.mxu1 %v2878_v4  ;;  %2503 = vmatprep.subr.bf16.mxu0 %v2878_v4 }
  0xdf   : > { %2329 = vmatprep.mubr.msk.f32.mxu1 %vm2879_vm1, %v2880_v16  ;;  %2395 = vmatprep.mubr.msk.f32.mxu0 %vm2879_vm1, %v2880_v16 }
  0xe1   : > { %2469 = vmatpush3.bf16.msra.mxu1 %v3256_v30  ;;  %2505 = vmatpush3.bf16.msra.mxu0 %v3362_v27 }
  0xe4   : > { %2330 = vmatmul.mubr.f32.vlgmr.msra.gmra.mrb[16].mxu1 %v3258_v31  ;;  %2396 = vmatmul.mubr.f32.vlgmr.msra.gmra.mrb[6].mxu0 %v3258_v31 }
 0x177   : > { %v434_v21 = vpop.f32.mrb[0].mxu1  ;;  %v932_v43 = vpop.f32.mrb[0].mxu0 }
 0x178   : > { %v2210_v49 = vpop.f32.mrb[1].mxu1  ;;  %v2276_v50 = vpop.f32.mrb[1].mxu0  ;;  %v435_v4 = vadd.f32 %v2084_v51, %v434_v21  ;;  %v933_v9 = vadd.f32 %v2090_v7, %v932_v43 }
 0x17f   : > { %v525_v52 = vpop.f32.mrb[2].mxu1  ;;  %v1103_v53 = vpop.f32.mrb[2].mxu0 }
 0x180   : > { %v526_v54 = vadd.f32 %v525_v52, %v435_v4  ;;  %v2221_v55 = vpop.f32.mrb[3].mxu1  ;;  %v2298_v16 = vpop.f32.mrb[3].mxu0 }
 0x187   : > { %v605_v56 = vpop.f32.mrb[4].mxu1  ;;  %v1263_v30 = vpop.f32.mrb[4].mxu0 }
 0x188   : > { %v606_v57 = vadd.f32 %v605_v56, %v526_v54  ;;  %v2232_v58 = vpop.f32.mrb[5].mxu1  ;;  %v2320_v59 = vpop.f32.mrb[5].mxu0 }
 0x18f   : > { %v682_v60 = vpop.f32.mrb[6].mxu1 }
 0x190   : > { %v683_v31 = vadd.f32 %v682_v60, %v606_v57  ;;  %v2243_v61 = vpop.f32.mrb[7].mxu1 }
 0x197   : > { %v765_v62 = vpop.f32.mrb[8].mxu1 }
 0x198   : > { %v766_v63 = vadd.f32 %v765_v62, %v683_v31  ;;  %v2254_v0 = vpop.f32.mrb[9].mxu1 }
 0x19f   : > { %v840_v1 = vpop.f32.mrb[10].mxu1 }
 0x1a0   : > { %v841_v3 = vadd.f32 %v840_v1, %v766_v63  ;;  %v2265_v5 = vpop.f32.mrb[11].mxu1 }
 0x1a2   : > { %v1841_v6 = vadd.f32 %v1840_v2, %v841_v3 }
 0x1a4   : > { %v2097_v8 = vmul.f32 -1.442695, %v1841_v6 }
 0x1a6   : > { %2643 = vpow2.f32 %v2097_v8 }
 0x1a7   : > { %v1023_v10 = vpop.f32.mrb[12].mxu1 }
 0x1a8   : > { %v1024_v11 = vadd.f32 %v1023_v10, %v933_v9  ;;  %v2287_v12 = vpop.f32.mrb[13].mxu1 }
 0x1aa   : > { %v1104_v13 = vadd.f32 %v1103_v53, %v1024_v11 }
 0x1af   : > { %v1180_v14 = vpop.f32.mrb[14].mxu1 }
 0x1b0   : > { %v2644_v15 = vpop.eup %2643  ;;  %v1181_v25 = vadd.f32 %v1180_v14, %v1104_v13  ;;  %v2309_v26 = vpop.f32.mrb[15].mxu1 }
 0x1b1   : > { %v1845_v27 = vadd.f32 1.0, %v2644_v15 }
 0x1b2   : > { %v1264_v32 = vadd.f32 %v1263_v30, %v1181_v25 }
 0x1b3   : > { %2645 = vrcp.f32 %v1845_v27 }
 0x1b7   : > { %v1338_v33 = vpop.f32.mrb[16].mxu1  ;;  %v1836_v40 = vpop.f32.mrb[6].mxu0 }
 0x1b8   : > { %v1339_v41 = vadd.f32 %v1338_v33, %v1264_v32  ;;  %v2331_v42 = vpop.f32.mrb[17].mxu1  ;;  %v2397_v45 = vpop.f32.mrb[7].mxu0  ;;  %v2506_v28 = vadd.f32 %v2096_v46, %v1836_v40 }
 0x1ba   : > { %v1850_v18 = vadd.f32 %v2098_v39, %v1339_v41 }
 0x1bc   : > { %v2099_v19 = vmul.f32 -1.442695, %v1850_v18 }
 0x1bd   : > { %v2646_v23 = vpop.eup %2645 }
 0x1be   : > { %2647 = vpow2.f32 %v2099_v19  ;;  %v1859_v24 = vmul.f32 %v2646_v23, %v2506_v28 }
 0x1c0   : > { %v1860_v36 = vadd.f32 %v2100_v29, %v1859_v24 }
 0x1c8   : > { %v2648_v34 = vpop.eup %2647 }
 0x1c9   : > { %v1854_v35 = vadd.f32 1.0, %v2648_v34 }
 0x1cb   : > { %2649 = vrcp.f32 %v1854_v35 }
 0x1cc   : > { %2651 = vtanh.f32 %v1860_v36 }
 0x1d5   : > { %v2650_v37 = vpop.eup %2649 }
 0x1d6   : > { %v1862_v17 = vsub.f32 1.0, %v2650_v37  ;;  %v2652_v48 = vpop.eup %2651  ;;  %v1864_v44 = vmul.f32 %v2650_v37, %v3238_v20  ;;  %1871 = sbr.rel (%p2101_p9) target bundleno = 478 (0x1de), region = 48 }
 0x1d8   : > { %v1863_v47 = vmul.f32 %v2652_v48, %v1862_v17 }
 0x1da   : > { %v1865_v22 = vadd.f32 %v1864_v44, %v1863_v47 }
 0x1dc   : > { %1866 = vst.msk [vmem:[#allocation2] sm:$0xff] %vm355_vm2, %v1865_v22  ;;  %1867 = vst.msk [vmem:[%s3213_s7] sm:$0xff] %vm355_vm2, %v1865_v22 }
 0x1dd   : > { %1872 = vst.msk [vmem:[%s3215_s13] sm:$0xff] %vm355_vm2, %v1865_v22 }
 0x1de PF: > { %s2104_s9 = sshll.u32 %s2859_s22, 1  ;;  %s3656_s18 = sld [smem:[#allocation22_spill]] }
 0x1df   : > { %s1887_s4 = ssub.s32 1, %s2104_s9  ;;  %s1889_s5 = smul.u32 7, %s2859_s22 }
 0x1e0   : > { %s1888_s29 = smul.u32 %s2855_s21, %s1887_s4  ;;  %s2105_s11 = sshll.u32 %s2859_s22, 3 }
 0x1e1   : > { %s1899_s8 = sshll.u32 %s3213_s7, 4  ;;  %s2107_s20 = sshll.u32 %s2859_s22, 7  ;;  %s3492_s8 = int_to_ptr.vmem [resolvable:$true] %s1899_s8 }
 0x1e2   : > { %s1890_s14 = sadd.s32 %s1889_s5, %s1888_s29  ;;  %s3657_s1 = sld [smem:[#allocation29_spill]] }
 0x1e3   : > { %s1895_s28 = sadd.s32 %s2105_s11, %s1890_s14  ;;  %s3658_s19 = sld [smem:[#allocation28_spill]] }
 0x1e4   : > { %s2106_s3 = sshll.u32 %s1895_s28, 7  ;;  %s1912_s7 = sshll.u32 %s3215_s13, 4  ;;  %s1913_s7 = int_to_ptr.vmem [resolvable:$true] %s1912_s7 }
 0x1e5   : > { %s1874_s4 = scalar_lea.sflag [#allocation5], %s3183_s30  ;;  %s2713_s5 = scalar_lea.vmem %s3492_s8, 128 }
 0x1e6   : > { %p2714_p11 = scmp.ne.s32.totalorder %s3492_s8, %s2713_s5  ;;  %p3660_p2 = scmp.ne.s32.totalorder %s3656_s18, 0 }
 0x1e7   : > { %s2881_s29 = smov [#allocation8]  }
 0x1e8   : > { %s3498_s2 = scalar_lea.hbm %s3657_s1, %s2107_s20  ;;  %p2715_p7 = pnand %p2714_p11, %p3660_p2 }
 0x1e9   : > { %s3659_s27 = smov %s3658_s19  ;;  %s3503_s21 = scalar_lea.hbm %s3658_s19, %s2106_s3 }
 0x1ea   : > { %p2716_p6 = pneg %p2715_p7  ;;  %s2717_s22 = sshll.u32 %s2881_s29, 4  ;;  %s2718_s22 = int_to_ptr.vmem [resolvable:$false] %s2717_s22 }
 0x1eb   : > { %s2719_s11 = scalar_lea.vmem %s2718_s22, 256  ;;  %p2720_p8 = scmp.lt.s32.totalorder %s3492_s8, %s2718_s22 }
 0x1ec   : > { %p2721_p0 = scmp.lt.s32.totalorder %s2719_s11, %s2713_s5 }
 0x1ee   : > { %p2722_p5 = por %p2721_p0, %p2720_p8 }
 0x1f0   : > { %p2723_p4 = pnand %p2722_p5, %p2716_p6 }
 0x1f2   : > { %2726 = shalt.err (!%p2723_p4)
}
 0x1f3   : > { %s2727_s0 = scalar_lea.hbm %s3503_s21, 128  ;;  %s2731_s30 = scalar_lea.hbm %s3659_s27, 2048 }
 0x1f4   : > { %p2728_p1 = scmp.ne.s32.totalorder %s3503_s21, %s2727_s0  ;;  %p2732_p3 = scmp.lt.u32.totalorder %s3503_s21, %s3659_s27 }
 0x1f5   : > { %p2733_p13 = scmp.lt.u32.totalorder %s2731_s30, %s2727_s0  ;;  %p2735_p11 = scmp.lt.u32.totalorder %s2727_s0, %s3503_s21 }
 0x1f6   : > { %p2729_p12 = pnand %p2728_p1, %p3660_p2 }
 0x1f7   : > { %p2734_p9 = por %p2733_p13, %p2732_p3 }
 0x1f8   : > { %p2730_p10 = pneg %p2729_p12 }
 0x1f9   : > { %p2736_p7 = por %p2735_p11, %p2734_p9 }
 0x1fb   : > { %p2737_p6 = pnand %p2736_p7, %p2730_p10 }
 0x1fd   : > { %2740 = shalt.err (!%p2737_p6)
}
 0x1fe   : > { %2529 = dma.vmem_to_hbm [thread:$0]  (%p3660_p2), %s3492_s8, 128, %s3503_s21, %s1874_s4  }
 0x1ff   : > { %s1879_s20 = scalar_lea.sflag [#allocation10], %s3194_s6  ;;  %s2741_s3 = scalar_lea.vmem %s1913_s7, 128 }
 0x200   : > { %p2742_p8 = scmp.ne.s32.totalorder %s1913_s7, %s2741_s3  ;;  %p3661_p0 = scmp.ne.s32.totalorder %s3643_s26, 0 }
 0x201   : > { %s2882_s23 = smov [#allocation9]  }
 0x202   : > { %p2743_p5 = pnand %p2742_p8, %p3661_p0  ;;  %s2745_s9 = sshll.u32 %s2882_s23, 4  ;;  %s2746_s9 = int_to_ptr.vmem [resolvable:$false] %s2745_s9 }
 0x203   : > { %s2747_s5 = scalar_lea.vmem %s2746_s9, 256  ;;  %p2748_p1 = scmp.lt.s32.totalorder %s1913_s7, %s2746_s9 }
 0x204   : > { %p2744_p4 = pneg %p2743_p5  ;;  %p2749_p12 = scmp.lt.s32.totalorder %s2747_s5, %s2741_s3 }
 0x206   : > { %p2750_p10 = por %p2749_p12, %p2748_p1 }
 0x208   : > { %p2751_p3 = pnand %p2750_p10, %p2744_p4 }
 0x20a   : > { %2754 = shalt.err (!%p2751_p3)
}
 0x20b   : > { %s2755_s6 = scalar_lea.hbm %s3498_s2, 128  ;;  %s2759_s8 = scalar_lea.hbm %s3657_s1, 256 }
 0x20c   : > { %p2756_p2 = scmp.ne.s32.totalorder %s3498_s2, %s2755_s6  ;;  %p2760_p11 = scmp.lt.u32.totalorder %s3498_s2, %s3657_s1 }
 0x20d   : > { %p2761_p7 = scmp.lt.u32.totalorder %s2759_s8, %s2755_s6  ;;  %p2763_p8 = scmp.lt.u32.totalorder %s2755_s6, %s3498_s2 }
 0x20e   : > { %p2757_p13 = pnand %p2756_p2, %p3661_p0 }
 0x20f   : > { %p2762_p6 = por %p2761_p7, %p2760_p11 }
 0x210   : > { %p2758_p9 = pneg %p2757_p13 }
 0x211   : > { %p2764_p5 = por %p2763_p8, %p2762_p6 }
 0x213   : > { %p2765_p4 = pnand %p2764_p5, %p2758_p9 }
 0x215   : > { %2768 = shalt.err (!%p2765_p4)
}
 0x216   : > { %2530 = dma.vmem_to_hbm [thread:$0]  (%p3661_p0), %s1913_s7, 128, %s3498_s2, %s1879_s20  }
 0x217 PF: > { %s3662_s29 = sld [smem:[#allocation15_spill]]  ;;  %p2548_p1 = scmp.ge.s32.totalorder %s2871_s25, 2 }
 0x218   : > { %p3663_p12 = scmp.ne.s32.totalorder %s3634_s12, 0 }
 0x21a   : > { %p2541_p10 = pnand %p2548_p1, %p3663_p12 }
 0x21d   : > { %s1924_s22 = sand.u32 1, %s3662_s29  }
 0x21e   : > { %s1925_s11 = scalar_lea.sflag [#allocation5], %s1924_s22 }
 0x21f   : > { %2822 = dma.done.wait (!%p2541_p10), %s1925_s11, 128  }
 0x220   : > { %2824 = vsyncadd (!%p2541_p10), %s1925_s11, 4294967168  ;;  %s1933_s0 = sand.u32 1, %s2831_s15   ;;  %p3664_p3 = scmp.ne.s32.totalorder %s3647_s10, 0 }
 0x221   : > { %s1934_s19 = scalar_lea.sflag [#allocation10], %s1933_s0 }
 0x222   : > { %p2544_p2 = pnand %p2548_p1, %p3664_p3 }
 0x224   : > { %2826 = dma.done.wait (!%p2544_p2), %s1934_s19, 128  }
 0x225   : > { %2828 = vsyncadd (!%p2544_p2), %s1934_s19, 4294967168  ;;  %s27_s25 = sadd.s32 1, %s2871_s25   ;;  %s3665_s2 = sld [smem:[#allocation24_spill]] }
 0x226   : > { %p24_p0 = scmp.ge.s32.totalorder %s27_s25, 18   ;;  %s3666_s18 = sld [smem:[#allocation16_spill]] }
 0x227   : > { %s3667_s19 = sld [smem:[#allocation17_spill]]  ;;  %s3668_s20 = sld [smem:[#allocation23_spill]] }
 0x228   : > { %s3669_s21 = sld [smem:[#allocation18_spill]]  ;;  %s3670_s22 = sld [smem:[#allocation19_spill]] }
 0x229   : > { %s3671_s23 = sld [smem:[#allocation20_spill]]  ;;  %s3672_s24 = sld [smem:[#allocation21_spill]] }
 0x22a   : > { %s3673_s15 = smov %s2835_s16  ;;  %s3674_s16 = smov %s2839_s17 }
 0x22b   : > { %s3675_s17 = smov %s3665_s2  ;;  %26 = sbr.rel (!%p24_p0) target bundleno = 19 (0x13), region = 124 }
 0x232   :  { %1939 = vsyncpa [#allocation4], 1 }
 0x233   :  { %1941 = vsyncpa [#allocation4 + $0x1], 1 }
 0x234   :  { %1942 = vsyncpa [#allocation7], 1 }
 0x235   :  { %1944 = vsyncpa [#allocation7 + $0x1], 1 }
 0x236   :  { %1945 = vsyncpa [#allocation5], 1 }
 0x237   :  { %1947 = vsyncpa [#allocation5 + $0x1], 1 }
 0x238   :  { %1948 = vsyncpa [#allocation10], 1 }
 0x239   :  { %1950 = vsyncpa [#allocation10 + $0x1], 1 }

</bundles_post_ra>
